<compile_context>
chip_gen: v7x
topology: tpu7x:2x2x1
jax: 0.10.0
libtpu: 0.0.40
codegen_flags: <defaults>
</compile_context>

<pallas_src>
import functools

import jax
import jax.numpy as jnp
from jax.experimental import pallas as pl
from jax.experimental.pallas import tpu as pltpu


# -----------------------------------------------------------------------------
# Kernel
# -----------------------------------------------------------------------------
def _linear_layer_kernel(x_ref, w1_ref, t1_ref, w2_ref, t2_ref, o_ref):
    # MXU matmuls on bf16 operands, f32 accumulation. Elementwise stays f32.
    xb = x_ref[...].astype(jnp.bfloat16)                               # (TB, L)
    y = jnp.dot(xb, w1_ref[...], preferred_element_type=jnp.float32)   # MXU
    y = jnp.maximum(y + t1_ref[...], 0.0)                              # folded BN1 + ReLU
    y = jnp.dot(y.astype(jnp.bfloat16), w2_ref[...],
                preferred_element_type=jnp.float32)                    # MXU
    y = jnp.maximum(y + t2_ref[...], 0.0)                              # folded BN2 + ReLU
    # Residual in f32: re-read x from the already VMEM-resident input block
    # (keeps vreg pressure low instead of carrying the tile across both matmuls).
    o_ref[...] = (x_ref[...].astype(jnp.float32) + y).astype(o_ref.dtype)


# -----------------------------------------------------------------------------
# pallas_call construction (cached; index_maps are module-level, not closures)
# -----------------------------------------------------------------------------
def _index_batch(i):
    return (i, 0)


def _index_const(i):
    return (0, 0)


def _make_pallas_call(Bp, L, x_itemsize, out_dtype, tb, weight_pipeline_mode):
    wkw = {} if weight_pipeline_mode is None else dict(pipeline_mode=weight_pipeline_mode)
    w_spec = pl.BlockSpec((L, L), _index_const, **wkw)   # grid-constant blocks
    v_spec = pl.BlockSpec((1, L), _index_const, **wkw)
    x_spec = pl.BlockSpec((tb, L), _index_batch)
    o_spec = pl.BlockSpec((tb, L), _index_batch)
    bytes_accessed = (Bp * L * x_itemsize                 # x stream
                      + Bp * L * jnp.dtype(out_dtype).itemsize   # out stream
                      + 2 * L * L * 2 + 2 * L * 4)        # bf16 weights + f32 shifts
    return pl.pallas_call(
        _linear_layer_kernel,
        out_shape=jax.ShapeDtypeStruct((Bp, L), out_dtype),
        grid_spec=pltpu.PrefetchScalarGridSpec(
            num_scalar_prefetch=0,
            grid=(Bp // tb,),
            in_specs=[x_spec, w_spec, v_spec, w_spec, v_spec],
            out_specs=o_spec,
        ),
        compiler_params=pltpu.CompilerParams(
            dimension_semantics=("parallel",),
            vmem_limit_bytes=32 * 1024 * 1024,
        ),
        cost_estimate=pl.CostEstimate(
            flops=4 * Bp * L * L,          # two (Bp, L) x (L, L) matmuls
            transcendentals=0,
            bytes_accessed=bytes_accessed,
        ),
    )


@functools.lru_cache(maxsize=None)
def _weight_pipeline_mode():
    """One-time (per-process) probe: single-buffer the grid-constant weight /
    shift blocks if this jax version accepts pl.Buffered(1); otherwise fall back
    to default double-buffering. Never runs in the per-call hot path."""
    if not hasattr(pl, "Buffered"):
        return None
    try:
        probe = _make_pallas_call(8, 128, 4, jnp.float32, 8, pl.Buffered(1))
        args = (
            jax.ShapeDtypeStruct((8, 128), jnp.float32),
            jax.ShapeDtypeStruct((128, 128), jnp.bfloat16),
            jax.ShapeDtypeStruct((1, 128), jnp.float32),
            jax.ShapeDtypeStruct((128, 128), jnp.bfloat16),
            jax.ShapeDtypeStruct((1, 128), jnp.float32),
        )
        jax.jit(probe).lower(*args).compile()
        return pl.Buffered(1)
    except Exception:
        # TODO(synk): pl.Buffered(1) rejected on this jax/backend; using default
        # double-buffered weight blocks (costs ~2x weight VMEM residency only).
        return None


@functools.lru_cache(maxsize=None)
def _build_forward(Bp, L, x_dtype_name, out_dtype_name, tb):
    return _make_pallas_call(
        Bp, L,
        jnp.dtype(x_dtype_name).itemsize,
        jnp.dtype(out_dtype_name),
        tb,
        _weight_pipeline_mode(),
    )


# -----------------------------------------------------------------------------
# Forward wrapper (pad -> kernel -> slice, all inside one jit)
# -----------------------------------------------------------------------------
def _round_up(n, m):
    return -(-n // m) * m


def _pick_tb(batch):
    """Batch-tile heuristic: multiple of 8 sublanes, tiles of at most ~512 rows
    (amortizes ~0.35 us/grid-step overhead on single-TC v5e/v6e), >= 2 grid
    steps once the batch can feed both v7x TensorCores, padding waste <= 7 rows."""
    b8 = _round_up(batch, 8)
    if b8 <= 256:
        return b8                                   # one small tile
    n_steps = max(2, _round_up(b8, 512) // 512)     # >= 2 steps, tiles <= ~512
    return _round_up(_round_up(b8, n_steps) // n_steps, 8)


@functools.partial(jax.jit, static_argnames=("tb", "out_dtype_name"))
def _forward_jit(x, w1f, t1, w2f, t2, *, tb, out_dtype_name):
    B, L = x.shape
    Bp = _round_up(B, tb)
    x_in = jnp.pad(x, ((0, Bp - B), (0, 0))) if Bp != B else x
    fwd = _build_forward(Bp, L, jnp.dtype(x.dtype).name, out_dtype_name, tb)
    out = fwd(x_in, w1f, t1, w2f, t2)
    return out[:B] if Bp != B else out   # padded rows are garbage; keep the slice


def linear_layer_forward(x, w1f, t1, w2f, t2, *, tb=None, out_dtype=None):
    """x: (B, L) f32 or bf16. w*f: (L, L) bf16 BN-folded weights stored (in, out).
    t*: (1, L) f32 folded shifts. Returns (B, L) in `out_dtype` (default x.dtype)."""
    B, L = x.shape
    if tb is None:
        tb = _pick_tb(B)
    assert tb % 8 == 0
    _weight_pipeline_mode()   # resolve the one-time probe outside the jit trace
    out_dtype_name = jnp.dtype(out_dtype if out_dtype is not None else x.dtype).name
    return _forward_jit(x, w1f, t1, w2f, t2, tb=tb, out_dtype_name=out_dtype_name)


# -----------------------------------------------------------------------------
# Host-side parameter construction (matches nn.Linear / nn.BatchNorm1d shapes).
# -----------------------------------------------------------------------------
def init_params(key, linear_size):
    L = linear_size
    ks = jax.random.split(key, 12)
    bound = 1.0 / jnp.sqrt(L)
    # nn.Linear weight is (out, in); stored transposed (in, out) so y = x @ W.
    w1 = jax.random.uniform(ks[0], (L, L), jnp.float32, -bound, bound)
    b1 = jax.random.uniform(ks[1], (1, L), jnp.float32, -bound, bound)
    w2 = jax.random.uniform(ks[2], (L, L), jnp.float32, -bound, bound)
    b2 = jax.random.uniform(ks[3], (1, L), jnp.float32, -bound, bound)
    # BatchNorm1d params / running stats (synthetic but deterministic).
    g1 = 1.0 + 0.1 * jax.random.normal(ks[4], (1, L), jnp.float32)
    be1 = 0.1 * jax.random.normal(ks[5], (1, L), jnp.float32)
    m1 = 0.05 * jax.random.normal(ks[6], (1, L), jnp.float32)
    v1 = 1.0 + 0.1 * jax.random.uniform(ks[7], (1, L), jnp.float32)
    g2 = 1.0 + 0.1 * jax.random.normal(ks[8], (1, L), jnp.float32)
    be2 = 0.1 * jax.random.normal(ks[9], (1, L), jnp.float32)
    m2 = 0.05 * jax.random.normal(ks[10], (1, L), jnp.float32)
    v2 = 1.0 + 0.1 * jax.random.uniform(ks[11], (1, L), jnp.float32)
    return w1, b1, g1, be1, m1, v1, w2, b2, g2, be2, m2, v2


def fold_params(w1, b1, g1, be1, m1, v1, w2, b2, g2, be2, m2, v2, eps=1e-5):
    """Fold eval-mode BN into the weights/shift; weights stored bf16 for the MXU."""
    s1 = g1 / jnp.sqrt(v1 + eps)
    s2 = g2 / jnp.sqrt(v2 + eps)
    w1f = (w1 * s1).astype(jnp.bfloat16)
    t1f = (b1 * s1 + (be1 - m1 * s1)).astype(jnp.float32)
    w2f = (w2 * s2).astype(jnp.bfloat16)
    t2f = (b2 * s2 + (be2 - m2 * s2)).astype(jnp.float32)
    return w1f, t1f, w2f, t2f


def reference_forward(x, w1, b1, g1, be1, m1, v1, w2, b2, g2, be2, m2, v2, eps=1e-5):
    def bn(y, g, be, m, v):
        return (y - m) / jnp.sqrt(v + eps) * g + be
    y = jnp.maximum(bn(x @ w1 + b1, g1, be1, m1, v1), 0.0)
    y = jnp.maximum(bn(y @ w2 + b2, g2, be2, m2, v2), 0.0)
    return x + y


if __name__ == "__main__":
    linear_size = 256
    batch = 512     # adaptive tiling picks tb=256 -> 2 grid steps (both v7x TCs busy)

    key = jax.random.PRNGKey(0)
    kx, kp = jax.random.split(key)
    x = jax.random.normal(kx, (batch, linear_size), jnp.float32)
    raw = init_params(kp, linear_size)
    folded = fold_params(*raw)

    ref = reference_forward(x, *raw)

    # Default path: f32 activations in/out.
    out = jax.block_until_ready(linear_layer_forward(x, *folded))
    assert out.shape == (batch, linear_size)
    assert out.dtype == x.dtype
    # bf16 MXU operands -> relaxed tolerance vs the pure-f32 reference.
    assert jnp.allclose(out, ref, atol=2e-2, rtol=2e-2), "mismatch vs reference"

    # Reduced-HBM-traffic path: bf16 activations in and out (residual still f32
    # in-kernel, cast only at the store).
    out_bf16 = jax.block_until_ready(
        linear_layer_forward(x.astype(jnp.bfloat16), *folded, out_dtype=jnp.bfloat16))
    assert out_bf16.shape == (batch, linear_size)
    assert out_bf16.dtype == jnp.bfloat16
    assert jnp.allclose(out_bf16.astype(jnp.float32), ref, atol=5e-2, rtol=5e-2), \
        "bf16-I/O path mismatch vs reference"

    print("KERNEL_OK")
</pallas_src>

<mosaic_0001>
module attributes {stable_mosaic.version = 11 : i64} {
  func.func @_linear_layer_kernel(%arg0: i32, %arg1: memref<256x256xf32, #tpu.memory_space<vmem>>, %arg2: memref<256x256xbf16, #tpu.memory_space<vmem>>, %arg3: memref<1x256xf32, #tpu.memory_space<vmem>>, %arg4: memref<256x256xbf16, #tpu.memory_space<vmem>>, %arg5: memref<1x256xf32, #tpu.memory_space<vmem>>, %arg6: memref<256x256xf32, #tpu.memory_space<vmem>>) attributes {dimension_semantics = [#tpu.dimension_semantics<parallel>], iteration_bounds = array<i64: 2>, scalar_prefetch = 0 : i64, scratch_operands = 0 : i64, tpu.core_type = #tpu.core_type<tc>, window_params = [{transform_indices = @transform_0, window_bounds = array<i64: 256, 256>}, {pipeline_mode = #tpu.pipeline_mode<synchronous>, transform_indices = @transform_1, window_bounds = array<i64: 256, 256>}, {pipeline_mode = #tpu.pipeline_mode<synchronous>, transform_indices = @transform_2, window_bounds = array<i64: 1, 256>}, {pipeline_mode = #tpu.pipeline_mode<synchronous>, transform_indices = @transform_3, window_bounds = array<i64: 256, 256>}, {pipeline_mode = #tpu.pipeline_mode<synchronous>, transform_indices = @transform_4, window_bounds = array<i64: 1, 256>}, {transform_indices = @transform_5, window_bounds = array<i64: 256, 256>}]} {
    %c0 = arith.constant 0 : index
    %c0_0 = arith.constant 0 : index
    %0 = vector.load %arg1[%c0, %c0_0] : memref<256x256xf32, #tpu.memory_space<vmem>>, vector<256x256xf32>
    %1 = arith.truncf %0 : vector<256x256xf32> to vector<256x256xbf16>
    %c0_1 = arith.constant 0 : index
    %c0_2 = arith.constant 0 : index
    %2 = vector.load %arg2[%c0_1, %c0_2] : memref<256x256xbf16, #tpu.memory_space<vmem>>, vector<256x256xbf16>
    %cst = arith.constant dense<0.000000e+00> : vector<256x256xf32>
    %3 = tpu.matmul %1, %2, %cst {dimension_numbers = #tpu.dot_dimension_numbers<[1], [0], [0], [1], [0, 0, 1, 1], [], []>} : vector<256x256xbf16>, vector<256x256xbf16>, vector<256x256xf32> -> vector<256x256xf32>
    %c0_3 = arith.constant 0 : index
    %c0_4 = arith.constant 0 : index
    %4 = vector.load %arg3[%c0_3, %c0_4] : memref<1x256xf32, #tpu.memory_space<vmem>>, vector<1x256xf32>
    %5 = vector.broadcast %4 : vector<1x256xf32> to vector<256x256xf32>
    %6 = arith.addf %3, %5 : vector<256x256xf32>
    %cst_5 = arith.constant 0.000000e+00 : f32
    %7 = vector.broadcast %cst_5 : f32 to vector<256x256xf32>
    %8 = arith.maximumf %6, %7 : vector<256x256xf32>
    %9 = arith.truncf %8 : vector<256x256xf32> to vector<256x256xbf16>
    %c0_6 = arith.constant 0 : index
    %c0_7 = arith.constant 0 : index
    %10 = vector.load %arg4[%c0_6, %c0_7] : memref<256x256xbf16, #tpu.memory_space<vmem>>, vector<256x256xbf16>
    %cst_8 = arith.constant dense<0.000000e+00> : vector<256x256xf32>
    %11 = tpu.matmul %9, %10, %cst_8 {dimension_numbers = #tpu.dot_dimension_numbers<[1], [0], [0], [1], [0, 0, 1, 1], [], []>} : vector<256x256xbf16>, vector<256x256xbf16>, vector<256x256xf32> -> vector<256x256xf32>
    %c0_9 = arith.constant 0 : index
    %c0_10 = arith.constant 0 : index
    %12 = vector.load %arg5[%c0_9, %c0_10] : memref<1x256xf32, #tpu.memory_space<vmem>>, vector<1x256xf32>
    %13 = vector.broadcast %12 : vector<1x256xf32> to vector<256x256xf32>
    %14 = arith.addf %11, %13 : vector<256x256xf32>
    %cst_11 = arith.constant 0.000000e+00 : f32
    %15 = vector.broadcast %cst_11 : f32 to vector<256x256xf32>
    %16 = arith.maximumf %14, %15 : vector<256x256xf32>
    %c0_12 = arith.constant 0 : index
    %c0_13 = arith.constant 0 : index
    %17 = vector.load %arg1[%c0_12, %c0_13] : memref<256x256xf32, #tpu.memory_space<vmem>>, vector<256x256xf32>
    %18 = arith.addf %17, %16 : vector<256x256xf32>
    %c0_14 = arith.constant 0 : index
    %c0_15 = arith.constant 0 : index
    %19 = vector.load %arg6[%c0_14, %c0_15] : memref<256x256xf32, #tpu.memory_space<vmem>>, vector<256x256xf32>
    tpu.vector_store %arg6[%c0_14, %c0_15], %18 {strides = array<i32>} : memref<256x256xf32, #tpu.memory_space<vmem>>, vector<256x256xf32>,
    return
  }
  func.func @transform_0(%arg0: i32) -> (i32, i32) {
    %c0_i32 = arith.constant 0 : i32
    %c0_i32_0 = arith.constant 0 : i32
    return %arg0, %c0_i32 : i32, i32
  }
  func.func @transform_1(%arg0: i32) -> (i32, i32) {
    %c0_i32 = arith.constant 0 : i32
    %c0_i32_0 = arith.constant 0 : i32
    %c0_i32_1 = arith.constant 0 : i32
    return %c0_i32, %c0_i32_0 : i32, i32
  }
  func.func @transform_2(%arg0: i32) -> (i32, i32) {
    %c0_i32 = arith.constant 0 : i32
    %c0_i32_0 = arith.constant 0 : i32
    %c0_i32_1 = arith.constant 0 : i32
    return %c0_i32, %c0_i32_0 : i32, i32
  }
  func.func @transform_3(%arg0: i32) -> (i32, i32) {
    %c0_i32 = arith.constant 0 : i32
    %c0_i32_0 = arith.constant 0 : i32
    %c0_i32_1 = arith.constant 0 : i32
    return %c0_i32, %c0_i32_0 : i32, i32
  }
  func.func @transform_4(%arg0: i32) -> (i32, i32) {
    %c0_i32 = arith.constant 0 : i32
    %c0_i32_0 = arith.constant 0 : i32
    %c0_i32_1 = arith.constant 0 : i32
    return %c0_i32, %c0_i32_0 : i32, i32
  }
  func.func @transform_5(%arg0: i32) -> (i32, i32) {
    %c0_i32 = arith.constant 0 : i32
    %c0_i32_0 = arith.constant 0 : i32
    return %arg0, %c0_i32 : i32, i32
  }
}

</mosaic_0001>

<bundles_post_ra>
// kernel: _forward_jit.1
= control target key start
LH: loop header
LB: loop body
LE: loop exit
PB: predicated region body
PF: predicated region fallthrough
CT: control target
= control target key end

     0   :  { %10 = vsyncpa [#allocation3], 0  ;;  %s2732_s0 = inlined_call_operand.hbm [shape: f32[512,256], index: 0, kind: input, shape index: {}]   ;;  %s2733_s1 = inlined_call_operand.hbm [shape: bf16[256,256], index: 1, kind: input, shape index: {}]   ;;  %s2734_s2 = inlined_call_operand.vmem [shape: f32[1,256], index: 2, kind: input, shape index: {}]   ;;  %s2735_s3 = inlined_call_operand.hbm [shape: bf16[256,256], index: 3, kind: input, shape index: {}]   ;;  %s2736_s4 = inlined_call_operand.vmem [shape: f32[1,256], index: 4, kind: input, shape index: {}]   ;;  %s2737_s5 = inlined_call_operand.hbm [shape: f32[512,256], index: 5, kind: output, shape index: {}]  }
   0x1   :  { %12 = vsyncpa [#allocation3 + $0x1], 0 }
   0x2   :  { %13 = vsyncpa [#allocation6], 0 }
   0x3   :  { %14 = vsyncpa [#allocation4], 0 }
   0x4   :  { %16 = vsyncpa [#allocation4 + $0x1], 0  ;;  %s2047_s18 = smov 0   ;;  %s2049_s19 = smov 0  }
   0x5   :  { %s2051_s20 = smov 0   ;;  %s2053_s21 = smov 0  }
   0x6 LB: > { %s2068_s22 = sadd.s32 4294967295, %s2005_s21   ;;  %s1560_s23 = sadd.s32 4294967294, %s2005_s21   ;;  %s2005_s21 = sphi %s2053_s21, %s2757_s21   ;;  %s2001_s20 = sphi %s2051_s20, %s2756_s20   ;;  %s1997_s19 = sphi %s2049_s19, %s2755_s19   ;;  %s1993_s18 = sphi %s2047_s18, %s2754_s18  }
   0x7   : > { %p42_p0 = scmp.ne.s32.totalorder %s1997_s19, %s1993_s18  ;;  %p2738_p1 = scmp.eq.s32.totalorder %s2068_s22, 0 }
   0x8   : > { %p156_p3 = scmp.eq.s32.totalorder %s1560_s23, 1  ;;  %p1561_p5 = scmp.ge.s32.totalorder %s2005_s21, 1 }
   0x9   : > { %p2077_p4 = por %p2738_p1, %p42_p0  ;;  %p163_p7 = scmp.lt.s32.totalorder %s2005_s21, 3 }
   0xa   : > { %p2082_p6 = por %p156_p3, %p42_p0  ;;  %s2007_s27 = smov [#allocation5]  }
   0xb   : > { %s2741_s24 = scalar_select %p2077_p4, 1, 0 }
   0xc   : > { %s2742_s25 = scalar_select %p2082_p6, 1, 0 }
   0xd   : > { %p2087_p8 = pnand %p1561_p5, %p163_p7  ;;  %s175_s28 = sshll.u32 %s2007_s27, 4  ;;  %s2091_s28 = int_to_ptr.vmem [resolvable:$true] %s175_s28 }
   0xe   : > { %s2008_s30 = smov [#allocation7]   ;;  %s1849_s9 = scalar_lea.hbm %s2733_s1, 4096 }
   0xf   : > { %p1660_p9 = pneg %p2087_p8  ;;  %s191_s6 = sshll.u32 %s2008_s30, 4  ;;  %s2102_s6 = int_to_ptr.vmem [resolvable:$true] %s191_s6 }
  0x10   : > { %p1850_p12 = scmp.ne.s32.totalorder %s2733_s1, %s1849_s9  ;;  %p1856_p5 = scmp.lt.u32.totalorder %s1849_s9, %s2733_s1 }
  0x11   : > { %p2098_p11 = pnand %p1660_p9, %p2738_p1 }
  0x13   : > { %p1851_p13 = pneg %p2098_p11 }
  0x15   : > { %p1852_p0 = pnand %p1851_p13, %p1850_p12 }
  0x17   : > { %p1853_p3 = pneg %p1852_p0 }
  0x19   : > { %p1858_p7 = pnand %p1856_p5, %p1853_p3 }
  0x1b   : > { %1861 = shalt.err (!%p1858_p7)
}
  0x1c   : > { %s1862_s14 = scalar_lea.vmem %s2091_s28, 4096  ;;  %p1870_p2 = scmp.lt.s32.totalorder %s2091_s28, %s2091_s28 }
  0x1d   : > { %p1863_p9 = scmp.ne.s32.totalorder %s2091_s28, %s1862_s14  ;;  %p1871_p12 = scmp.lt.s32.totalorder %s1862_s14, %s1862_s14 }
  0x1f   : > { %p1865_p10 = pnand %p1863_p9, %p1851_p13  ;;  %p1872_p0 = por %p1871_p12, %p1870_p2 }
  0x21   : > { %p1866_p1 = pneg %p1865_p10 }
  0x23   : > { %p1873_p6 = pnand %p1872_p0, %p1866_p1 }
  0x25   : > { %1876 = shalt.err (!%p1873_p6)
}
  0x26   : > { %s2009_s15 = smov 128   ;;  %s2010_s16 = smov 8  }
  0x27   : > { %1663 = dma.hbm_to_vmem [thread:$0]  (!%p2098_p11), %s2733_s1, 4096, %s2091_s28, [#allocation6], %s2009_s15, %s2009_s15, %s2010_s16  }
  0x28   : > { %s1877_s7 = scalar_lea.hbm %s2735_s3, 4096 }
  0x29   : > { %p1878_p2 = scmp.ne.s32.totalorder %s2735_s3, %s1877_s7  ;;  %p1884_p10 = scmp.lt.u32.totalorder %s1877_s7, %s2735_s3 }
  0x2b   : > { %p1880_p1 = pnand %p1878_p2, %p1851_p13 }
  0x2d   : > { %p1881_p6 = pneg %p1880_p1 }
  0x2f   : > { %p1886_p3 = pnand %p1884_p10, %p1881_p6 }
  0x31   : > { %1889 = shalt.err (!%p1886_p3)
}
  0x32   : > { %s1890_s28 = scalar_lea.vmem %s2102_s6, 4096  ;;  %p1898_p12 = scmp.lt.s32.totalorder %s2102_s6, %s2102_s6 }
  0x33   : > { %p1891_p5 = scmp.ne.s32.totalorder %s2102_s6, %s1890_s28  ;;  %p1899_p0 = scmp.lt.s32.totalorder %s1890_s28, %s1890_s28 }
  0x35   : > { %p1893_p7 = pnand %p1891_p5, %p1851_p13  ;;  %p1900_p2 = por %p1899_p0, %p1898_p12 }
  0x37   : > { %p1894_p9 = pneg %p1893_p7 }
  0x39   : > { %p1901_p1 = pnand %p1900_p2, %p1894_p9 }
  0x3b   : > { %1904 = shalt.err (!%p1901_p1)
}
  0x3c   : > { %1666 = dma.hbm_to_vmem [thread:$0]  (!%p2098_p11), %s2735_s3, 4096, %s2102_s6, [#allocation6], %s2009_s15, %s2009_s15, %s2010_s16  }
  0x3d   : > { %s2157_s14 = sadd.s32 1, %s2005_s21   ;;  %s29_s29 = sadd.s32 1, %s2001_s20 }
  0x3e   : > { %s26_s17 = ssub.s32 %s2005_s21, %s2157_s14  ;;  %p36_p13 = scmp.ne.s32.totalorder %s2001_s20, %s1997_s19 }
  0x3f   : > { %p27_p6 = scmp.eq.s32.totalorder %s26_s17, 0  ;;  %p37_p10 = scmp.eq.s32.totalorder %s2005_s21, 0 }
  0x40   : > { %p2745_p3 = scmp.eq.s32.totalorder %s2068_s22, 1  ;;  %p1677_p7 = scmp.lt.s32.totalorder %s2005_s21, 2 }
  0x41   : > { %s2173_s27 = scalar_select %p27_p6, %s2001_s20, %s29_s29  }
  0x42   : > { %p2167_p5 = por %p2745_p3, %p36_p13  ;;  %p38_p9 = por %p37_p10, %p36_p13 }
  0x43   : > { %s208_s30 = sand.u32 1, %s2001_s20   ;;  %s1645_s6 = sshll.u32 %s2005_s21, 13 }
  0x44   : > { %s2746_s23 = scalar_select %p2167_p5, 1, 0 }
  0x45   : > { %s1565_s7 = sshll.u32 %s208_s30, 9  ;;  %s2180_s8 = scalar_lea.hbm %s2732_s0, %s1645_s6 }
  0x46   : > { %s212_s9 = scalar_lea.vmem [#allocation2], %s1565_s7  ;;  %p2184_p11 = pnand %p1677_p7, %p38_p9 }
  0x47   : > { %s220_s10 = sshll.u32 %s212_s9, 4  ;;  %s2188_s28 = scalar_lea.sflag [#allocation3], %s208_s30  ;;  %s2182_s10 = int_to_ptr.vmem [resolvable:$true] %s220_s10 }
  0x48   : > { %s1905_s12 = scalar_lea.hbm %s2180_s8, 8192  ;;  %p1907_p0 = pneg %p2184_p11 }
  0x49   : > { %p1906_p12 = scmp.ne.s32.totalorder %s2180_s8, %s1905_s12  ;;  %s1910_s17 = scalar_lea.hbm %s2732_s0, 16384 }
  0x4a   : > { %p1911_p13 = scmp.lt.u32.totalorder %s2180_s8, %s2732_s0  ;;  %p1912_p6 = scmp.lt.u32.totalorder %s1910_s17, %s1905_s12 }
  0x4b   : > { %p1908_p2 = pnand %p1907_p0, %p1906_p12  ;;  %p1914_p3 = scmp.lt.u32.totalorder %s1905_s12, %s2180_s8 }
  0x4c   : > { %p1913_p10 = por %p1912_p6, %p1911_p13 }
  0x4d   : > { %p1909_p1 = pneg %p1908_p2 }
  0x4e   : > { %p1915_p7 = por %p1914_p3, %p1913_p10 }
  0x50   : > { %p1916_p9 = pnand %p1915_p7, %p1909_p1 }
  0x52   : > { %1919 = shalt.err (!%p1916_p9)
}
  0x53   : > { %s1920_s30 = scalar_lea.vmem %s2182_s10, 8192  ;;  %s2011_s15 = smov [#allocation2]  }
  0x54   : > { %p1921_p12 = scmp.ne.s32.totalorder %s2182_s10, %s1920_s30  ;;  %s1925_s16 = sshll.u32 %s2011_s15, 4  ;;  %s1926_s16 = int_to_ptr.vmem [resolvable:$false] %s1925_s16 }
  0x55   : > { %s1927_s9 = scalar_lea.vmem %s1926_s16, 16384  ;;  %p1928_p4 = scmp.lt.s32.totalorder %s2182_s10, %s1926_s16 }
  0x56   : > { %p1923_p2 = pnand %p1921_p12, %p1907_p0  ;;  %p1929_p13 = scmp.lt.s32.totalorder %s1927_s9, %s1920_s30 }
  0x58   : > { %p1924_p5 = pneg %p1923_p2  ;;  %p1930_p6 = por %p1929_p13, %p1928_p4 }
  0x5a   : > { %p1931_p10 = pnand %p1930_p6, %p1924_p5 }
  0x5c   : > { %1934 = shalt.err (!%p1931_p10)
}
  0x5d   : > { %s2012_s12 = smov 256   ;;  %s2013_s13 = smov 16  }
  0x5e   : > { %1670 = dma.hbm_to_vmem [thread:$0]  (!%p2184_p11), %s2180_s8, 8192, %s2182_s10, %s2188_s28, %s2012_s12, %s2012_s12, %s2013_s13  }
  0x5f   : > { %232 = sbr.rel (%p2087_p8) target bundleno = 749 (0x2ed), region = 40  ;;  %s2219_s29 = sand.u32 (!%p2087_p8), 1, %s1997_s19  }
  0x60   : > { %s1570_s17 = sshll.u32 (!%p2087_p8), %s2219_s29, 9  ;;  %s235_s7 = scalar_lea.sflag (!%p2087_p8), [#allocation3], %s2219_s29 }
  0x61   : > { %s2225_s6 = scalar_lea.vmem (!%p2087_p8), [#allocation2], %s1570_s17  ;;  %p2748_p4 = scmp.ne.s32.totalorder (!%p2087_p8), %s2741_s24, 0 }
  0x66   : > { %1980 = dma.done.wait (%p2748_p4), %s235_s7, 8192  }
  0x67   : > { %1982 = vsyncadd (%p2748_p4), %s235_s7, 4294959104  ;;  %p2749_p5 = scmp.eq.s32.totalorder %s2068_s22, 0 }
  0x69   : > { %1984 = dma.done.wait (%p2749_p5), [#allocation6], 8192   ;;  %p2750_p8 = pmov %p2749_p5 }
  0x6a   : > { %v1721_v0 = vld [vmem:[#allocation5 + $0x4] ss:$8 sps:$4 sm:$0xff]   ;;  %v1723_v1 = vld [vmem:[#allocation5] ss:$8 sps:$4 sm:$0xff]   ;;  %v1724_v2 = vld [vmem:[#allocation5 + $0x14] ss:$8 sps:$4 sm:$0xff]  }
  0x6b   : > { %1986 = vsyncadd (%p2750_p8), [#allocation6], 4294959104  ;;  %575 = vmatprep.subr.bf16.mxu0 %v1721_v0  ;;  %v1726_v3 = vld [vmem:[#allocation5 + $0x10] ss:$8 sps:$4 sm:$0xff]   ;;  %v1727_v4 = vld [vmem:[#allocation5 + $0x24] ss:$8 sps:$4 sm:$0xff]  }
  0x6c   : > { %576 = vmatpush1.bf16.msra.mxu0 %v1723_v1  ;;  %v1729_v5 = vld [vmem:[#allocation5 + $0x20] ss:$8 sps:$4 sm:$0xff]   ;;  %v1730_v6 = vld [vmem:[#allocation5 + $0x34] ss:$8 sps:$4 sm:$0xff]   ;;  %v1732_v7 = vld [vmem:[#allocation5 + $0x30] ss:$8 sps:$4 sm:$0xff]  }
  0x6d   : > { %577 = vmatprep.subr.bf16.mxu0 %v1724_v2  ;;  %v1733_v8 = vld [vmem:[#allocation5 + $0x44] ss:$8 sps:$4 sm:$0xff]   ;;  %v1735_v9 = vld [vmem:[#allocation5 + $0x40] ss:$8 sps:$4 sm:$0xff]   ;;  %v1736_v10 = vld [vmem:[#allocation5 + $0x54] ss:$8 sps:$4 sm:$0xff]  }
  0x6e   : > { %v1738_v11 = vld [vmem:[#allocation5 + $0x50] ss:$8 sps:$4 sm:$0xff]   ;;  %v1739_v12 = vld [vmem:[#allocation5 + $0x64] ss:$8 sps:$4 sm:$0xff]   ;;  %v1741_v16 = vld [vmem:[#allocation5 + $0x60] ss:$8 sps:$4 sm:$0xff]  }
  0x6f   : > { %v276_v13 = vld [vmem:[%s2225_s6 + $0x8] sm:$0xff]  ;;  %v278_v14 = vld [vmem:[%s2225_s6 + $0x18] sm:$0xff]  ;;  %v2238_v38 = vld [vmem:[%s2225_s6] sm:$0xff]  ;;  %s2493_s11 = scalar_lea.vmem [#allocation8], %s1570_s17  ;;  %s1647_s28 = sshll.u32 %s2068_s22, 13 }
  0x70   : > { %578 = vmatpush1.bf16.msra.mxu0 %v1726_v3  ;;  %v340_v15 = vpack.c.bf16 %v278_v14, %v276_v13  ;;  %v1742_v17 = vld [vmem:[#allocation5 + $0x74] ss:$8 sps:$4 sm:$0xff]   ;;  %v1744_v18 = vld [vmem:[#allocation5 + $0x70] ss:$8 sps:$4 sm:$0xff]   ;;  %v1745_v19 = vld [vmem:[#allocation5 + $0x84] ss:$8 sps:$4 sm:$0xff]   ;;  %s2682_s9 = scalar_lea.hbm %s2737_s5, %s1647_s28 }
  0x71   : > { %579 = vmatprep.subr.bf16.mxu0 %v1727_v4  ;;  %v1747_v20 = vld [vmem:[#allocation5 + $0x80] ss:$8 sps:$4 sm:$0xff]   ;;  %v1748_v21 = vld [vmem:[#allocation5 + $0x94] ss:$8 sps:$4 sm:$0xff]   ;;  %v1750_v22 = vld [vmem:[#allocation5 + $0x90] ss:$8 sps:$4 sm:$0xff]  }
  0x72   : > { %607 = vmatprep.mubr.bf16.mxu0 %v340_v15  ;;  %v1751_v23 = vld [vmem:[#allocation5 + $0xa4] ss:$8 sps:$4 sm:$0xff]   ;;  %v1753_v24 = vld [vmem:[#allocation5 + $0xa0] ss:$8 sps:$4 sm:$0xff]   ;;  %v1754_v25 = vld [vmem:[#allocation5 + $0xb4] ss:$8 sps:$4 sm:$0xff]  }
  0x73   : > { %v1756_v26 = vld [vmem:[#allocation5 + $0xb0] ss:$8 sps:$4 sm:$0xff]   ;;  %v1757_v27 = vld [vmem:[#allocation5 + $0xc4] ss:$8 sps:$4 sm:$0xff]   ;;  %v1759_v28 = vld [vmem:[#allocation5 + $0xc0] ss:$8 sps:$4 sm:$0xff]  }
  0x74   : > { %580 = vmatpush1.bf16.msra.mxu0 %v1729_v5  ;;  %v1760_v29 = vld [vmem:[#allocation5 + $0xd4] ss:$8 sps:$4 sm:$0xff]   ;;  %v1762_v30 = vld [vmem:[#allocation5 + $0xd0] ss:$8 sps:$4 sm:$0xff]   ;;  %v1763_v31 = vld [vmem:[#allocation5 + $0xe4] ss:$8 sps:$4 sm:$0xff]  }
  0x75   : > { %581 = vmatprep.subr.bf16.mxu0 %v1730_v6  ;;  %v1765_v32 = vld [vmem:[#allocation5 + $0xe0] ss:$8 sps:$4 sm:$0xff]   ;;  %v1766_v33 = vld [vmem:[#allocation5 + $0xf4] ss:$8 sps:$4 sm:$0xff]   ;;  %v1769_v34 = vld [vmem:[#allocation7 + $0x4] ss:$8 sps:$4 sm:$0xff]  }
  0x76   : > { %v1771_v35 = vld [vmem:[#allocation7] ss:$8 sps:$4 sm:$0xff]   ;;  %v1772_v36 = vld [vmem:[#allocation7 + $0x14] ss:$8 sps:$4 sm:$0xff]   ;;  %v1768_v37 = vld [vmem:[#allocation5 + $0xf0] ss:$8 sps:$4 sm:$0xff]   ;;  %1068 = vmatprep.subr.bf16.mxu1 %v1769_v34 }
  0x77   : > { %v2241_v39 = vld [vmem:[%s2225_s6 + $0x10] sm:$0xff]  ;;  %v2244_v40 = vld [vmem:[%s2225_s6 + $0x28] sm:$0xff]  ;;  %v2247_v41 = vld [vmem:[%s2225_s6 + $0x38] sm:$0xff]  ;;  %1069 = vmatpush1.bf16.msra.mxu1 %v1771_v35  ;;  %s1468_s30 = sshll.u32 %s2493_s11, 4  ;;  %s1454_s22 = scalar_lea.sflag [#allocation4], %s2219_s29  ;;  %s2684_s30 = int_to_ptr.vmem [resolvable:$true] %s1468_s30 }
  0x78   : > { %582 = vmatpush1.bf16.msra.mxu0 %v1732_v7  ;;  %v1774_v42 = vld [vmem:[#allocation7 + $0x10] ss:$8 sps:$4 sm:$0xff]   ;;  %v339_v43 = vpack.c.bf16 %v2241_v39, %v2238_v38  ;;  %1070 = vmatprep.subr.bf16.mxu1 %v1772_v36  ;;  %v1775_v44 = vld [vmem:[#allocation7 + $0x24] ss:$8 sps:$4 sm:$0xff]   ;;  %v342_v45 = vpack.c.bf16 %v2247_v41, %v2244_v40  ;;  %v1777_v46 = vld [vmem:[#allocation7 + $0x20] ss:$8 sps:$4 sm:$0xff]  }
  0x79   : > { %583 = vmatprep.subr.bf16.mxu0 %v1733_v8  ;;  %v1778_v47 = vld [vmem:[#allocation7 + $0x34] ss:$8 sps:$4 sm:$0xff]   ;;  %v2254_v48 = vld [vmem:[%s2225_s6 + $0x20] sm:$0xff]  ;;  %v2260_v50 = vld [vmem:[%s2225_s6 + $0x48] sm:$0xff]  ;;  %s1935_s12 = scalar_lea.vmem %s2684_s30, 8192  ;;  %p2751_p0 = scmp.ne.s32.totalorder %s2746_s23, 0 }
  0x7a   : > { %v2257_v49 = vld [vmem:[%s2225_s6 + $0x30] sm:$0xff]  ;;  %v2263_v51 = vld [vmem:[%s2225_s6 + $0x58] sm:$0xff]  ;;  %v1781_v54 = vld [vmem:[#allocation7 + $0x44] ss:$8 sps:$4 sm:$0xff]   ;;  %p1936_p11 = scmp.ne.s32.totalorder %s2684_s30, %s1935_s12  ;;  %s2014_s13 = smov [#allocation8]  }
  0x7b   : > { %1071 = vmatpush1.bf16.msra.mxu1 %v1774_v42  ;;  %v1780_v52 = vld [vmem:[#allocation7 + $0x30] ss:$8 sps:$4 sm:$0xff]   ;;  %v341_v53 = vpack.c.bf16 %v2257_v49, %v2254_v48  ;;  %v344_v55 = vpack.c.bf16 %v2263_v51, %v2260_v50  ;;  %v1783_v56 = vld [vmem:[#allocation7 + $0x40] ss:$8 sps:$4 sm:$0xff]   ;;  %v1784_v57 = vld [vmem:[#allocation7 + $0x54] ss:$8 sps:$4 sm:$0xff]  }
  0x7c   : > { %584 = vmatpush1.bf16.msra.mxu0 %v1735_v9  ;;  %1072 = vmatprep.subr.bf16.mxu1 %v1775_v44  ;;  %v2270_v58 = vld [vmem:[%s2225_s6 + $0x40] sm:$0xff]  ;;  %v2273_v59 = vld [vmem:[%s2225_s6 + $0x50] sm:$0xff]  ;;  %v2276_v60 = vld [vmem:[%s2225_s6 + $0x68] sm:$0xff]  ;;  %p1937_p1 = pnand %p1936_p11, %p2751_p0  ;;  %s1939_s17 = sshll.u32 %s2014_s13, 4  ;;  %s1940_s17 = int_to_ptr.vmem [resolvable:$false] %s1939_s17 }
  0x7d   : > { %585 = vmatprep.subr.bf16.mxu0 %v1736_v10  ;;  %v2279_v61 = vld [vmem:[%s2225_s6 + $0x78] sm:$0xff]  ;;  %v343_v63 = vpack.c.bf16 %v2273_v59, %v2270_v58  ;;  %v1787_v0 = vld [vmem:[#allocation7 + $0x64] ss:$8 sps:$4 sm:$0xff]   ;;  %v1789_v2 = vld [vmem:[#allocation7 + $0x60] ss:$8 sps:$4 sm:$0xff]   ;;  %s1941_s7 = scalar_lea.vmem %s1940_s17, 16384  ;;  %p1942_p7 = scmp.lt.s32.totalorder %s2684_s30, %s1940_s17 }
  0x7e   : > { %v1786_v62 = vld [vmem:[#allocation7 + $0x50] ss:$8 sps:$4 sm:$0xff]   ;;  %v346_v1 = vpack.c.bf16 %v2279_v61, %v2276_v60  ;;  %v1790_v3 = vld [vmem:[#allocation7 + $0x74] ss:$8 sps:$4 sm:$0xff]   ;;  %v2286_v4 = vld [vmem:[%s2225_s6 + $0x60] sm:$0xff]  ;;  %p1938_p3 = pneg %p1937_p1  ;;  %p1943_p9 = scmp.lt.s32.totalorder %s1941_s7, %s1935_s12 }
  0x7f   : > { %1073 = vmatpush1.bf16.msra.mxu1 %v1777_v46  ;;  %v2289_v5 = vld [vmem:[%s2225_s6 + $0x70] sm:$0xff]  ;;  %v2292_v6 = vld [vmem:[%s2225_s6 + $0x88] sm:$0xff]  ;;  %v2295_v7 = vld [vmem:[%s2225_s6 + $0x98] sm:$0xff] }
  0x80   : > { %586 = vmatpush1.bf16.msra.mxu0 %v1738_v11  ;;  %1074 = vmatprep.subr.bf16.mxu1 %v1778_v47  ;;  %v1792_v8 = vld [vmem:[#allocation7 + $0x70] ss:$8 sps:$4 sm:$0xff]   ;;  %v345_v9 = vpack.c.bf16 %v2289_v5, %v2286_v4  ;;  %v1793_v10 = vld [vmem:[#allocation7 + $0x84] ss:$8 sps:$4 sm:$0xff]   ;;  %v348_v11 = vpack.c.bf16 %v2295_v7, %v2292_v6  ;;  %v1796_v13 = vld [vmem:[#allocation7 + $0x94] ss:$8 sps:$4 sm:$0xff]   ;;  %p1944_p12 = por %p1943_p9, %p1942_p7 }
  0x81   : > { %587 = vmatprep.subr.bf16.mxu0 %v1739_v12  ;;  %v1795_v12 = vld [vmem:[#allocation7 + $0x80] ss:$8 sps:$4 sm:$0xff]   ;;  %v2305_v15 = vld [vmem:[%s2225_s6 + $0x90] sm:$0xff]  ;;  %v310_v47 = vld [vmem:[%s2225_s6 + $0x118] sm:$0xff] }
  0x82   : > { %v2302_v14 = vld [vmem:[%s2225_s6 + $0x80] sm:$0xff]  ;;  %v2337_v35 = vld [vmem:[%s2225_s6 + $0xd0] sm:$0xff]  ;;  %v2340_v36 = vld [vmem:[%s2225_s6 + $0xe8] sm:$0xff]  ;;  %p1945_p2 = pnand %p1944_p12, %p1938_p3 }
  0x83   : > { %1075 = vmatpush1.bf16.msra.mxu1 %v1780_v52  ;;  %v2334_v34 = vld [vmem:[%s2225_s6 + $0xc0] sm:$0xff]  ;;  %v308_v46 = vld [vmem:[%s2225_s6 + $0x108] sm:$0xff] }
  0x84   : > { %588 = vmatpush1.bf16.msra.mxu0 %v1741_v16  ;;  %1076 = vmatprep.subr.bf16.mxu1 %v1781_v54  ;;  %v2308_v16 = vld [vmem:[%s2225_s6 + $0xa8] sm:$0xff]  ;;  %v351_v42 = vpack.c.bf16 %v2337_v35, %v2334_v34  ;;  %v2350_v44 = vld [vmem:[%s2225_s6 + $0xe0] sm:$0xff] }
  0x85   : > { %589 = vmatprep.subr.bf16.mxu0 %v1742_v17  ;;  %v2311_v17 = vld [vmem:[%s2225_s6 + $0xb8] sm:$0xff]  ;;  %v2360_v54 = vld [vmem:[%s2225_s6 + $0x100] sm:$0xff] }
  0x87   : > { %1077 = vmatpush1.bf16.msra.mxu1 %v1783_v56  ;;  %v312_v56 = vld [vmem:[%s2225_s6 + $0x128] sm:$0xff] }
  0x88   : > { %590 = vmatpush1.bf16.msra.mxu0 %v1744_v18  ;;  %1078 = vmatprep.subr.bf16.mxu1 %v1784_v57  ;;  %v1798_v18 = vld [vmem:[#allocation7 + $0x90] ss:$8 sps:$4 sm:$0xff]  }
  0x89   : > { %591 = vmatprep.subr.bf16.mxu0 %v1745_v19  ;;  %v347_v19 = vpack.c.bf16 %v2305_v15, %v2302_v14  ;;  %v314_v57 = vld [vmem:[%s2225_s6 + $0x138] sm:$0xff] }
  0x8b   : > { %1079 = vmatpush1.bf16.msra.mxu1 %v1786_v62 }
  0x8c   : > { %592 = vmatpush1.bf16.msra.mxu0 %v1747_v20  ;;  %1080 = vmatprep.subr.bf16.mxu1 %v1787_v0  ;;  %v1799_v20 = vld [vmem:[#allocation7 + $0xa4] ss:$8 sps:$4 sm:$0xff]  }
  0x8d   : > { %593 = vmatprep.subr.bf16.mxu0 %v1748_v21  ;;  %v350_v21 = vpack.c.bf16 %v2311_v17, %v2308_v16  ;;  %v311_v0 = vld [vmem:[%s2225_s6 + $0x120] sm:$0xff] }
  0x8f   : > { %1081 = vmatpush1.bf16.msra.mxu1 %v1789_v2  ;;  %v316_v2 = vld [vmem:[%s2225_s6 + $0x148] sm:$0xff] }
  0x90   : > { %594 = vmatpush1.bf16.msra.mxu0 %v1750_v22  ;;  %1082 = vmatprep.subr.bf16.mxu1 %v1790_v3  ;;  %v1801_v22 = vld [vmem:[#allocation7 + $0xa0] ss:$8 sps:$4 sm:$0xff]   ;;  %v318_v3 = vld [vmem:[%s2225_s6 + $0x158] sm:$0xff] }
  0x91   : > { %595 = vmatprep.subr.bf16.mxu0 %v1751_v23  ;;  %v1802_v23 = vld [vmem:[#allocation7 + $0xb4] ss:$8 sps:$4 sm:$0xff]  }
  0x93   : > { %1083 = vmatpush1.bf16.msra.mxu1 %v1792_v8 }
  0x94   : > { %596 = vmatpush1.bf16.msra.mxu0 %v1753_v24  ;;  %1084 = vmatprep.subr.bf16.mxu1 %v1793_v10  ;;  %v2318_v24 = vld [vmem:[%s2225_s6 + $0xa0] sm:$0xff] }
  0x95   : > { %597 = vmatprep.subr.bf16.mxu0 %v1754_v25  ;;  %v2321_v25 = vld [vmem:[%s2225_s6 + $0xb0] sm:$0xff]  ;;  %v315_v10 = vld [vmem:[%s2225_s6 + $0x140] sm:$0xff] }
  0x97   : > { %1085 = vmatpush1.bf16.msra.mxu1 %v1795_v12  ;;  %v320_v12 = vld [vmem:[%s2225_s6 + $0x168] sm:$0xff] }
  0x98   : > { %598 = vmatpush1.bf16.msra.mxu0 %v1756_v26  ;;  %1086 = vmatprep.subr.bf16.mxu1 %v1796_v13  ;;  %v2324_v26 = vld [vmem:[%s2225_s6 + $0xc8] sm:$0xff]  ;;  %v322_v13 = vld [vmem:[%s2225_s6 + $0x178] sm:$0xff] }
  0x99   : > { %599 = vmatprep.subr.bf16.mxu0 %v1757_v27  ;;  %v2327_v27 = vld [vmem:[%s2225_s6 + $0xd8] sm:$0xff] }
  0x9b   : > { %1087 = vmatpush1.bf16.msra.mxu1 %v1798_v18 }
  0x9c   : > { %600 = vmatpush1.bf16.msra.mxu0 %v1759_v28  ;;  %1088 = vmatprep.subr.bf16.mxu1 %v1799_v20  ;;  %v1804_v28 = vld [vmem:[#allocation7 + $0xb0] ss:$8 sps:$4 sm:$0xff]   ;;  %v319_v20 = vld [vmem:[%s2225_s6 + $0x160] sm:$0xff] }
  0x9d   : > { %601 = vmatprep.subr.bf16.mxu0 %v1760_v29  ;;  %v349_v29 = vpack.c.bf16 %v2321_v25, %v2318_v24 }
  0x9f   : > { %1089 = vmatpush1.bf16.msra.mxu1 %v1801_v22  ;;  %v1810_v22 = vld [vmem:[#allocation7 + $0xd0] ss:$8 sps:$4 sm:$0xff]  }
  0xa0   : > { %602 = vmatpush1.bf16.msra.mxu0 %v1762_v30  ;;  %1090 = vmatprep.subr.bf16.mxu1 %v1802_v23  ;;  %v1805_v30 = vld [vmem:[#allocation7 + $0xc4] ss:$8 sps:$4 sm:$0xff]  }
  0xa1   : > { %603 = vmatprep.subr.bf16.mxu0 %v1763_v31  ;;  %v352_v31 = vpack.c.bf16 %v2327_v27, %v2324_v26  ;;  %v324_v23 = vld [vmem:[%s2225_s6 + $0x188] sm:$0xff] }
  0xa3   : > { %1091 = vmatpush1.bf16.msra.mxu1 %v1804_v28  ;;  %v326_v28 = vld [vmem:[%s2225_s6 + $0x198] sm:$0xff] }
  0xa4   : > { %604 = vmatpush1.bf16.msra.mxu0 %v1765_v32  ;;  %v1807_v32 = vld [vmem:[#allocation7 + $0xc0] ss:$8 sps:$4 sm:$0xff]   ;;  %1092 = vmatprep.subr.bf16.mxu1 %v1805_v30  ;;  %v1811_v30 = vld [vmem:[#allocation7 + $0xe4] ss:$8 sps:$4 sm:$0xff]  }
  0xa5   : > { %605 = vmatprep.subr.bf16.mxu0 %v1766_v33  ;;  %v1808_v33 = vld [vmem:[#allocation7 + $0xd4] ss:$8 sps:$4 sm:$0xff]  }
  0xa7   : > { %1093 = vmatpush1.bf16.msra.mxu1 %v1807_v32  ;;  %v1813_v32 = vld [vmem:[#allocation7 + $0xe0] ss:$8 sps:$4 sm:$0xff]  }
  0xa8   : > { %606 = vmatpush1.bf16.msra.mxu0 %v1768_v37  ;;  %v2343_v37 = vld [vmem:[%s2225_s6 + $0xf8] sm:$0xff]  ;;  %1094 = vmatprep.subr.bf16.mxu1 %v1808_v33 }
  0xa9   : > { %v1814_v33 = vld [vmem:[#allocation7 + $0xf4] ss:$8 sps:$4 sm:$0xff]  }
  0xab   : > { %608 = vmatmul.mubr.bf16.vlgmr.msra.gmra.mrb[0].mxu0 %v339_v43  ;;  %v354_v43 = vpack.c.bf16 %v2343_v37, %v2340_v36  ;;  %1095 = vmatpush1.bf16.msra.mxu1 %v1810_v22 }
  0xac   : > { %617 = vmatprep.mubr.bf16.mxu0 %v342_v45  ;;  %v2353_v45 = vld [vmem:[%s2225_s6 + $0xf0] sm:$0xff]  ;;  %1096 = vmatprep.subr.bf16.mxu1 %v1811_v30 }
  0xad   : > { %v353_v52 = vpack.c.bf16 %v2353_v45, %v2350_v44 }
  0xaf   : > { %1097 = vmatpush1.bf16.msra.mxu1 %v1813_v32 }
  0xb0   : > { %1098 = vmatprep.subr.bf16.mxu1 %v1814_v33 }
  0xb3   : > { %618 = vmatmul.mubr.bf16.gmra.mrb[4].mxu0 %v341_v53  ;;  %v356_v53 = vpack.c.bf16 %v310_v47, %v308_v46  ;;  %v1816_v46 = vld [vmem:[#allocation7 + $0xf0] ss:$8 sps:$4 sm:$0xff]   ;;  %v328_v47 = vld [vmem:[%s2225_s6 + $0x1a8] sm:$0xff] }
  0xb4   : > { %627 = vmatprep.mubr.bf16.mxu0 %v344_v55  ;;  %v2363_v55 = vld [vmem:[%s2225_s6 + $0x110] sm:$0xff]  ;;  %1099 = vmatpush1.bf16.msra.mxu1 %v1816_v46 }
  0xb5   : > { %v355_v62 = vpack.c.bf16 %v2363_v55, %v2360_v54 }
  0xbb   : > { %628 = vmatmul.mubr.bf16.gmra.mrb[8].mxu0 %v343_v63  ;;  %v358_v63 = vpack.c.bf16 %v314_v57, %v312_v56  ;;  %v327_v57 = vld [vmem:[%s2225_s6 + $0x1a0] sm:$0xff] }
  0xbc   : > { %637 = vmatprep.mubr.bf16.mxu0 %v346_v1  ;;  %v313_v1 = vld [vmem:[%s2225_s6 + $0x130] sm:$0xff] }
  0xbd   : > { %v357_v8 = vpack.c.bf16 %v313_v1, %v311_v0  ;;  %v334_v0 = vld [vmem:[%s2225_s6 + $0x1d8] sm:$0xff] }
  0xc3   : > { %638 = vmatmul.mubr.bf16.gmra.mrb[12].mxu0 %v345_v9  ;;  %v360_v9 = vpack.c.bf16 %v318_v3, %v316_v2  ;;  %v331_v3 = vld [vmem:[%s2225_s6 + $0x1c0] sm:$0xff] }
  0xc4   : > { %647 = vmatprep.mubr.bf16.mxu0 %v348_v11  ;;  %v317_v11 = vld [vmem:[%s2225_s6 + $0x150] sm:$0xff] }
  0xc5   : > { %v359_v18 = vpack.c.bf16 %v317_v11, %v315_v10  ;;  %v338_v10 = vld [vmem:[%s2225_s6 + $0x1f8] sm:$0xff] }
  0xcb   : > { %648 = vmatmul.mubr.bf16.gmra.mrb[16].mxu0 %v347_v19  ;;  %v362_v19 = vpack.c.bf16 %v322_v13, %v320_v12  ;;  %v335_v13 = vld [vmem:[%s2225_s6 + $0x1e0] sm:$0xff] }
  0xcc   : > { %657 = vmatprep.mubr.bf16.mxu0 %v350_v21  ;;  %v321_v21 = vld [vmem:[%s2225_s6 + $0x170] sm:$0xff] }
  0xd3   : > { %658 = vmatmul.mubr.bf16.gmra.mrb[20].mxu0 %v349_v29  ;;  %v361_v29 = vpack.c.bf16 %v321_v21, %v319_v20  ;;  %v405_v20 = vlaneseq }
  0xd4   : > { %667 = vmatprep.mubr.bf16.mxu0 %v352_v31  ;;  %v364_v31 = vpack.c.bf16 %v326_v28, %v324_v23  ;;  %v403_v23 = vld [vmem:[%s2734_s2] sm:$0x3] }
  0xd5   : > { %v2395_v21 = vshrl.u32 %v405_v20, 7 }
  0xd7   : > { %v407_v22 = vsub.s32 0, %v2395_v21  ;;  %v411_v28 = vsub.s32 1, %v2395_v21 }
  0xd9   : > { %v2408_v30 = vrot.slane %v403_v23, %v411_v28 }
  0xdb   : > { %668 = vmatmul.mubr.bf16.gmra.mrb[24].mxu0 %v351_v42  ;;  %v323_v42 = vld [vmem:[%s2225_s6 + $0x180] sm:$0xff] }
  0xdc   : > { %677 = vmatprep.mubr.bf16.mxu0 %v354_v43  ;;  %v325_v43 = vld [vmem:[%s2225_s6 + $0x190] sm:$0xff] }
  0xe3   : > { %678 = vmatmul.mubr.bf16.gmra.mrb[28].mxu0 %v353_v52  ;;  %v330_v52 = vld [vmem:[%s2225_s6 + $0x1b8] sm:$0xff] }
  0xe4   : > { %687 = vmatprep.mubr.bf16.mxu0 %v356_v53  ;;  %v363_v53 = vpack.c.bf16 %v325_v43, %v323_v42  ;;  %v366_v56 = vpack.c.bf16 %v330_v52, %v328_v47 }
  0xeb   : > { %688 = vmatmul.mubr.bf16.gmra.mrb[32].mxu0 %v355_v62  ;;  %v329_v62 = vld [vmem:[%s2225_s6 + $0x1b0] sm:$0xff] }
  0xec   : > { %697 = vmatprep.mubr.bf16.mxu0 %v358_v63  ;;  %v332_v63 = vld [vmem:[%s2225_s6 + $0x1c8] sm:$0xff]  ;;  %v365_v1 = vpack.c.bf16 %v329_v62, %v327_v57 }
  0xed   : > { %v368_v2 = vpack.c.bf16 %v334_v0, %v332_v63 }
  0xf3   : > { %698 = vmatmul.mubr.bf16.gmra.mrb[36].mxu0 %v357_v8  ;;  %v333_v8 = vld [vmem:[%s2225_s6 + $0x1d0] sm:$0xff] }
  0xf4   : > { %707 = vmatprep.mubr.bf16.mxu0 %v360_v9  ;;  %v336_v9 = vld [vmem:[%s2225_s6 + $0x1e8] sm:$0xff]  ;;  %v367_v11 = vpack.c.bf16 %v333_v8, %v331_v3 }
  0xf5   : > { %v370_v12 = vpack.c.bf16 %v338_v10, %v336_v9 }
  0xfb   : > { %708 = vmatmul.mubr.bf16.gmra.mrb[40].mxu0 %v359_v18  ;;  %v337_v18 = vld [vmem:[%s2225_s6 + $0x1f0] sm:$0xff] }
  0xfc   : > { %717 = vmatprep.mubr.bf16.mxu0 %v362_v19  ;;  %v369_v19 = vpack.c.bf16 %v337_v18, %v335_v13 }
 0x103   : > { %718 = vmatmul.mubr.bf16.gmra.mrb[44].mxu0 %v361_v29  ;;  %v2404_v29 = vrot.slane %v403_v23, %v407_v22 }
 0x104   : > { %727 = vmatprep.mubr.bf16.mxu0 %v364_v31 }
 0x10b   : > { %728 = vmatmul.mubr.bf16.gmra.mrb[48].mxu0 %v363_v53 }
 0x10c   : > { %737 = vmatprep.mubr.bf16.mxu0 %v366_v56 }
 0x113   : > { %738 = vmatmul.mubr.bf16.gmra.mrb[52].mxu0 %v365_v1 }
 0x114   : > { %747 = vmatprep.mubr.bf16.mxu0 %v368_v2 }
 0x11b   : > { %748 = vmatmul.mubr.bf16.gmra.mrb[56].mxu0 %v367_v11 }
 0x11c   : > { %757 = vmatprep.mubr.bf16.mxu0 %v370_v12 }
 0x123   : > { %758 = vmatmul.mubr.bf16.gmra.mrb[60].mxu0 %v369_v19 }
 0x17e   : > { %v609_v31 = vpop.f32.mrb[0].mxu0 }
 0x17f   : > { %v610_v32 = vadd.f32 %v609_v31, %v2404_v29  ;;  %v611_v33 = vpop.f32.mrb[1].mxu0 }
 0x180   : > { %v612_v42 = vadd.f32 %v611_v33, %v2408_v30  ;;  %v613_v43 = vpop.f32.mrb[2].mxu0 }
 0x181   : > { %v614_v46 = vadd.f32 %v613_v43, %v2404_v29  ;;  %v615_v47 = vpop.f32.mrb[3].mxu0  ;;  %v768_v53 = vmax.f32 %v610_v32, 0.0 }
 0x182   : > { %v616_v52 = vadd.f32 %v615_v47, %v2408_v30  ;;  %v769_v57 = vmax.f32 %v612_v42, 0.0 }
 0x183   : > { %v770_v56 = vmax.f32 %v614_v46, 0.0 }
 0x184   : > { %v771_v62 = vmax.f32 %v616_v52, 0.0 }
 0x185   : > { %v832_v63 = vpack.c.bf16 %v770_v56, %v768_v53 }
 0x186   : > { %v619_v0 = vpop.f32.mrb[4].mxu0  ;;  %v833_v1 = vpack.c.bf16 %v771_v62, %v769_v57 }
 0x187   : > { %v620_v2 = vadd.f32 %v619_v0, %v2404_v29  ;;  %v621_v3 = vpop.f32.mrb[5].mxu0 }
 0x188   : > { %v622_v8 = vadd.f32 %v621_v3, %v2408_v30  ;;  %v623_v9 = vpop.f32.mrb[6].mxu0  ;;  %1100 = vmatprep.mubr.bf16.mxu1 %v833_v1 }
 0x189   : > { %v624_v10 = vadd.f32 %v623_v9, %v2404_v29  ;;  %v625_v11 = vpop.f32.mrb[7].mxu0  ;;  %1101 = vmatmul.mubr.bf16.vlgmr.msra.gmra.mrb[0].mxu1 %v832_v63  ;;  %v772_v13 = vmax.f32 %v620_v2, 0.0 }
 0x18a   : > { %v626_v12 = vadd.f32 %v625_v11, %v2408_v30  ;;  %v773_v19 = vmax.f32 %v622_v8, 0.0 }
 0x18b   : > { %v774_v18 = vmax.f32 %v624_v10, 0.0 }
 0x18c   : > { %v775_v20 = vmax.f32 %v626_v12, 0.0 }
 0x18d   : > { %v834_v23 = vpack.c.bf16 %v774_v18, %v772_v13 }
 0x18e   : > { %v835_v31 = vpack.c.bf16 %v775_v20, %v773_v19  ;;  %v629_v32 = vpop.f32.mrb[8].mxu0 }
 0x18f   : > { %v630_v33 = vadd.f32 %v629_v32, %v2404_v29  ;;  %v631_v42 = vpop.f32.mrb[9].mxu0 }
 0x190   : > { %v632_v43 = vadd.f32 %v631_v42, %v2408_v30  ;;  %v633_v46 = vpop.f32.mrb[10].mxu0  ;;  %1110 = vmatprep.mubr.bf16.mxu1 %v835_v31 }
 0x191   : > { %v634_v47 = vadd.f32 %v633_v46, %v2404_v29  ;;  %v635_v52 = vpop.f32.mrb[11].mxu0  ;;  %1111 = vmatmul.mubr.bf16.gmra.mrb[4].mxu1 %v834_v23  ;;  %v776_v56 = vmax.f32 %v630_v33, 0.0 }
 0x192   : > { %v636_v53 = vadd.f32 %v635_v52, %v2408_v30  ;;  %v777_v62 = vmax.f32 %v632_v43, 0.0 }
 0x193   : > { %v778_v57 = vmax.f32 %v634_v47, 0.0 }
 0x194   : > { %v779_v63 = vmax.f32 %v636_v53, 0.0 }
 0x195   : > { %v836_v0 = vpack.c.bf16 %v778_v57, %v776_v56 }
 0x196   : > { %v837_v1 = vpack.c.bf16 %v779_v63, %v777_v62  ;;  %v639_v2 = vpop.f32.mrb[12].mxu0 }
 0x197   : > { %v640_v3 = vadd.f32 %v639_v2, %v2404_v29  ;;  %v641_v8 = vpop.f32.mrb[13].mxu0 }
 0x198   : > { %v642_v9 = vadd.f32 %v641_v8, %v2408_v30  ;;  %v643_v10 = vpop.f32.mrb[14].mxu0  ;;  %1120 = vmatprep.mubr.bf16.mxu1 %v837_v1 }
 0x199   : > { %v644_v11 = vadd.f32 %v643_v10, %v2404_v29  ;;  %v645_v12 = vpop.f32.mrb[15].mxu0  ;;  %1121 = vmatmul.mubr.bf16.gmra.mrb[8].mxu1 %v836_v0  ;;  %v780_v18 = vmax.f32 %v640_v3, 0.0 }
 0x19a   : > { %v646_v13 = vadd.f32 %v645_v12, %v2408_v30  ;;  %v781_v20 = vmax.f32 %v642_v9, 0.0 }
 0x19b   : > { %v782_v19 = vmax.f32 %v644_v11, 0.0 }
 0x19c   : > { %v783_v23 = vmax.f32 %v646_v13, 0.0 }
 0x19d   : > { %v838_v31 = vpack.c.bf16 %v782_v19, %v780_v18 }
 0x19e   : > { %v839_v32 = vpack.c.bf16 %v783_v23, %v781_v20  ;;  %v649_v33 = vpop.f32.mrb[16].mxu0 }
 0x19f   : > { %v650_v42 = vadd.f32 %v649_v33, %v2404_v29  ;;  %v651_v43 = vpop.f32.mrb[17].mxu0 }
 0x1a0   : > { %v652_v46 = vadd.f32 %v651_v43, %v2408_v30  ;;  %v653_v47 = vpop.f32.mrb[18].mxu0  ;;  %1130 = vmatprep.mubr.bf16.mxu1 %v839_v32 }
 0x1a1   : > { %v654_v52 = vadd.f32 %v653_v47, %v2404_v29  ;;  %v655_v53 = vpop.f32.mrb[19].mxu0  ;;  %1131 = vmatmul.mubr.bf16.gmra.mrb[12].mxu1 %v838_v31  ;;  %v784_v57 = vmax.f32 %v650_v42, 0.0 }
 0x1a2   : > { %v656_v56 = vadd.f32 %v655_v53, %v2408_v30  ;;  %v785_v63 = vmax.f32 %v652_v46, 0.0 }
 0x1a3   : > { %v786_v62 = vmax.f32 %v654_v52, 0.0 }
 0x1a4   : > { %v787_v0 = vmax.f32 %v656_v56, 0.0 }
 0x1a5   : > { %v840_v1 = vpack.c.bf16 %v786_v62, %v784_v57 }
 0x1a6   : > { %v841_v2 = vpack.c.bf16 %v787_v0, %v785_v63  ;;  %v659_v3 = vpop.f32.mrb[20].mxu0 }
 0x1a7   : > { %v660_v8 = vadd.f32 %v659_v3, %v2404_v29  ;;  %v661_v9 = vpop.f32.mrb[21].mxu0 }
 0x1a8   : > { %v662_v10 = vadd.f32 %v661_v9, %v2408_v30  ;;  %v663_v11 = vpop.f32.mrb[22].mxu0  ;;  %1140 = vmatprep.mubr.bf16.mxu1 %v841_v2 }
 0x1a9   : > { %v664_v12 = vadd.f32 %v663_v11, %v2404_v29  ;;  %v665_v13 = vpop.f32.mrb[23].mxu0  ;;  %1141 = vmatmul.mubr.bf16.gmra.mrb[16].mxu1 %v840_v1  ;;  %v788_v19 = vmax.f32 %v660_v8, 0.0 }
 0x1aa   : > { %v666_v18 = vadd.f32 %v665_v13, %v2408_v30  ;;  %v789_v23 = vmax.f32 %v662_v10, 0.0 }
 0x1ab   : > { %v790_v20 = vmax.f32 %v664_v12, 0.0 }
 0x1ac   : > { %v791_v31 = vmax.f32 %v666_v18, 0.0 }
 0x1ad   : > { %v842_v32 = vpack.c.bf16 %v790_v20, %v788_v19 }
 0x1ae   : > { %v843_v33 = vpack.c.bf16 %v791_v31, %v789_v23  ;;  %v669_v42 = vpop.f32.mrb[24].mxu0 }
 0x1af   : > { %v670_v43 = vadd.f32 %v669_v42, %v2404_v29  ;;  %v671_v46 = vpop.f32.mrb[25].mxu0 }
 0x1b0   : > { %v672_v47 = vadd.f32 %v671_v46, %v2408_v30  ;;  %v673_v52 = vpop.f32.mrb[26].mxu0  ;;  %1150 = vmatprep.mubr.bf16.mxu1 %v843_v33 }
 0x1b1   : > { %v674_v53 = vadd.f32 %v673_v52, %v2404_v29  ;;  %v675_v56 = vpop.f32.mrb[27].mxu0  ;;  %1151 = vmatmul.mubr.bf16.gmra.mrb[20].mxu1 %v842_v32  ;;  %v792_v62 = vmax.f32 %v670_v43, 0.0 }
 0x1b2   : > { %v676_v57 = vadd.f32 %v675_v56, %v2408_v30  ;;  %v793_v0 = vmax.f32 %v672_v47, 0.0 }
 0x1b3   : > { %v794_v63 = vmax.f32 %v674_v53, 0.0 }
 0x1b4   : > { %v795_v1 = vmax.f32 %v676_v57, 0.0 }
 0x1b5   : > { %v844_v2 = vpack.c.bf16 %v794_v63, %v792_v62 }
 0x1b6   : > { %v845_v3 = vpack.c.bf16 %v795_v1, %v793_v0  ;;  %v679_v8 = vpop.f32.mrb[28].mxu0 }
 0x1b7   : > { %v680_v9 = vadd.f32 %v679_v8, %v2404_v29  ;;  %v681_v10 = vpop.f32.mrb[29].mxu0 }
 0x1b8   : > { %v682_v11 = vadd.f32 %v681_v10, %v2408_v30  ;;  %v683_v12 = vpop.f32.mrb[30].mxu0  ;;  %1160 = vmatprep.mubr.bf16.mxu1 %v845_v3 }
 0x1b9   : > { %v684_v13 = vadd.f32 %v683_v12, %v2404_v29  ;;  %v685_v18 = vpop.f32.mrb[31].mxu0  ;;  %1161 = vmatmul.mubr.bf16.gmra.mrb[24].mxu1 %v844_v2  ;;  %v796_v20 = vmax.f32 %v680_v9, 0.0 }
 0x1ba   : > { %v686_v19 = vadd.f32 %v685_v18, %v2408_v30  ;;  %v797_v31 = vmax.f32 %v682_v11, 0.0 }
 0x1bb   : > { %v798_v23 = vmax.f32 %v684_v13, 0.0 }
 0x1bc   : > { %v799_v32 = vmax.f32 %v686_v19, 0.0 }
 0x1bd   : > { %v846_v33 = vpack.c.bf16 %v798_v23, %v796_v20 }
 0x1be   : > { %v847_v42 = vpack.c.bf16 %v799_v32, %v797_v31  ;;  %v689_v43 = vpop.f32.mrb[32].mxu0 }
 0x1bf   : > { %v690_v46 = vadd.f32 %v689_v43, %v2404_v29  ;;  %v691_v47 = vpop.f32.mrb[33].mxu0 }
 0x1c0   : > { %v692_v52 = vadd.f32 %v691_v47, %v2408_v30  ;;  %v693_v53 = vpop.f32.mrb[34].mxu0  ;;  %1170 = vmatprep.mubr.bf16.mxu1 %v847_v42 }
 0x1c1   : > { %v694_v56 = vadd.f32 %v693_v53, %v2404_v29  ;;  %v695_v57 = vpop.f32.mrb[35].mxu0  ;;  %1171 = vmatmul.mubr.bf16.gmra.mrb[28].mxu1 %v846_v33  ;;  %v800_v63 = vmax.f32 %v690_v46, 0.0 }
 0x1c2   : > { %v696_v62 = vadd.f32 %v695_v57, %v2408_v30  ;;  %v801_v1 = vmax.f32 %v692_v52, 0.0 }
 0x1c3   : > { %v802_v0 = vmax.f32 %v694_v56, 0.0 }
 0x1c4   : > { %v803_v2 = vmax.f32 %v696_v62, 0.0 }
 0x1c5   : > { %v848_v3 = vpack.c.bf16 %v802_v0, %v800_v63 }
 0x1c6   : > { %v849_v8 = vpack.c.bf16 %v803_v2, %v801_v1  ;;  %v699_v9 = vpop.f32.mrb[36].mxu0 }
 0x1c7   : > { %v700_v10 = vadd.f32 %v699_v9, %v2404_v29  ;;  %v701_v11 = vpop.f32.mrb[37].mxu0 }
 0x1c8   : > { %v702_v12 = vadd.f32 %v701_v11, %v2408_v30  ;;  %v703_v13 = vpop.f32.mrb[38].mxu0  ;;  %1180 = vmatprep.mubr.bf16.mxu1 %v849_v8 }
 0x1c9   : > { %v704_v18 = vadd.f32 %v703_v13, %v2404_v29  ;;  %v705_v19 = vpop.f32.mrb[39].mxu0  ;;  %1181 = vmatmul.mubr.bf16.gmra.mrb[32].mxu1 %v848_v3  ;;  %v804_v23 = vmax.f32 %v700_v10, 0.0 }
 0x1ca   : > { %v706_v20 = vadd.f32 %v705_v19, %v2408_v30  ;;  %v805_v32 = vmax.f32 %v702_v12, 0.0 }
 0x1cb   : > { %v806_v31 = vmax.f32 %v704_v18, 0.0 }
 0x1cc   : > { %v807_v33 = vmax.f32 %v706_v20, 0.0 }
 0x1cd   : > { %v850_v42 = vpack.c.bf16 %v806_v31, %v804_v23 }
 0x1ce   : > { %v851_v43 = vpack.c.bf16 %v807_v33, %v805_v32  ;;  %v709_v46 = vpop.f32.mrb[40].mxu0 }
 0x1cf   : > { %v710_v47 = vadd.f32 %v709_v46, %v2404_v29  ;;  %v711_v52 = vpop.f32.mrb[41].mxu0 }
 0x1d0   : > { %v712_v53 = vadd.f32 %v711_v52, %v2408_v30  ;;  %v713_v56 = vpop.f32.mrb[42].mxu0  ;;  %1190 = vmatprep.mubr.bf16.mxu1 %v851_v43 }
 0x1d1   : > { %v714_v57 = vadd.f32 %v713_v56, %v2404_v29  ;;  %v715_v62 = vpop.f32.mrb[43].mxu0  ;;  %1191 = vmatmul.mubr.bf16.gmra.mrb[36].mxu1 %v850_v42  ;;  %v808_v0 = vmax.f32 %v710_v47, 0.0 }
 0x1d2   : > { %v716_v63 = vadd.f32 %v715_v62, %v2408_v30  ;;  %v809_v2 = vmax.f32 %v712_v53, 0.0 }
 0x1d3   : > { %v810_v1 = vmax.f32 %v714_v57, 0.0 }
 0x1d4   : > { %v811_v3 = vmax.f32 %v716_v63, 0.0 }
 0x1d5   : > { %v852_v8 = vpack.c.bf16 %v810_v1, %v808_v0 }
 0x1d6   : > { %v853_v9 = vpack.c.bf16 %v811_v3, %v809_v2  ;;  %v719_v10 = vpop.f32.mrb[44].mxu0 }
 0x1d7   : > { %v720_v11 = vadd.f32 %v719_v10, %v2404_v29  ;;  %v721_v12 = vpop.f32.mrb[45].mxu0 }
 0x1d8   : > { %v722_v13 = vadd.f32 %v721_v12, %v2408_v30  ;;  %v723_v18 = vpop.f32.mrb[46].mxu0  ;;  %1200 = vmatprep.mubr.bf16.mxu1 %v853_v9 }
 0x1d9   : > { %v724_v19 = vadd.f32 %v723_v18, %v2404_v29  ;;  %v725_v20 = vpop.f32.mrb[47].mxu0  ;;  %1201 = vmatmul.mubr.bf16.gmra.mrb[40].mxu1 %v852_v8  ;;  %v812_v31 = vmax.f32 %v720_v11, 0.0 }
 0x1da   : > { %v726_v23 = vadd.f32 %v725_v20, %v2408_v30  ;;  %v813_v33 = vmax.f32 %v722_v13, 0.0 }
 0x1db   : > { %v814_v32 = vmax.f32 %v724_v19, 0.0 }
 0x1dc   : > { %v815_v42 = vmax.f32 %v726_v23, 0.0 }
 0x1dd   : > { %v854_v43 = vpack.c.bf16 %v814_v32, %v812_v31 }
 0x1de   : > { %v855_v46 = vpack.c.bf16 %v815_v42, %v813_v33  ;;  %v729_v47 = vpop.f32.mrb[48].mxu0 }
 0x1df   : > { %v730_v52 = vadd.f32 %v729_v47, %v2404_v29  ;;  %v731_v53 = vpop.f32.mrb[49].mxu0 }
 0x1e0   : > { %v732_v56 = vadd.f32 %v731_v53, %v2408_v30  ;;  %v733_v57 = vpop.f32.mrb[50].mxu0  ;;  %1210 = vmatprep.mubr.bf16.mxu1 %v855_v46 }
 0x1e1   : > { %v734_v62 = vadd.f32 %v733_v57, %v2404_v29  ;;  %v735_v63 = vpop.f32.mrb[51].mxu0  ;;  %1211 = vmatmul.mubr.bf16.gmra.mrb[44].mxu1 %v854_v43  ;;  %v816_v1 = vmax.f32 %v730_v52, 0.0 }
 0x1e2   : > { %v736_v0 = vadd.f32 %v735_v63, %v2408_v30  ;;  %v817_v3 = vmax.f32 %v732_v56, 0.0 }
 0x1e3   : > { %v818_v2 = vmax.f32 %v734_v62, 0.0 }
 0x1e4   : > { %v819_v8 = vmax.f32 %v736_v0, 0.0 }
 0x1e5   : > { %v856_v9 = vpack.c.bf16 %v818_v2, %v816_v1 }
 0x1e6   : > { %v857_v10 = vpack.c.bf16 %v819_v8, %v817_v3  ;;  %v739_v11 = vpop.f32.mrb[52].mxu0 }
 0x1e7   : > { %v740_v12 = vadd.f32 %v739_v11, %v2404_v29  ;;  %v741_v13 = vpop.f32.mrb[53].mxu0 }
 0x1e8   : > { %v742_v18 = vadd.f32 %v741_v13, %v2408_v30  ;;  %v743_v19 = vpop.f32.mrb[54].mxu0  ;;  %1220 = vmatprep.mubr.bf16.mxu1 %v857_v10 }
 0x1e9   : > { %v744_v20 = vadd.f32 %v743_v19, %v2404_v29  ;;  %v745_v23 = vpop.f32.mrb[55].mxu0  ;;  %1221 = vmatmul.mubr.bf16.gmra.mrb[48].mxu1 %v856_v9  ;;  %v820_v32 = vmax.f32 %v740_v12, 0.0 }
 0x1ea   : > { %v746_v31 = vadd.f32 %v745_v23, %v2408_v30  ;;  %v821_v42 = vmax.f32 %v742_v18, 0.0 }
 0x1eb   : > { %v822_v33 = vmax.f32 %v744_v20, 0.0 }
 0x1ec   : > { %v823_v43 = vmax.f32 %v746_v31, 0.0 }
 0x1ed   : > { %v858_v46 = vpack.c.bf16 %v822_v33, %v820_v32 }
 0x1ee   : > { %v859_v47 = vpack.c.bf16 %v823_v43, %v821_v42  ;;  %v749_v52 = vpop.f32.mrb[56].mxu0 }
 0x1ef   : > { %v750_v53 = vadd.f32 %v749_v52, %v2404_v29  ;;  %v751_v56 = vpop.f32.mrb[57].mxu0 }
 0x1f0   : > { %v752_v57 = vadd.f32 %v751_v56, %v2408_v30  ;;  %v753_v62 = vpop.f32.mrb[58].mxu0  ;;  %1230 = vmatprep.mubr.bf16.mxu1 %v859_v47 }
 0x1f1   : > { %v754_v63 = vadd.f32 %v753_v62, %v2404_v29  ;;  %v755_v0 = vpop.f32.mrb[59].mxu0  ;;  %1231 = vmatmul.mubr.bf16.gmra.mrb[52].mxu1 %v858_v46  ;;  %v824_v2 = vmax.f32 %v750_v53, 0.0  ;;  %v896_v53 = vld [vmem:[%s2736_s4] sm:$0x3] }
 0x1f2   : > { %v756_v1 = vadd.f32 %v755_v0, %v2408_v30  ;;  %v825_v8 = vmax.f32 %v752_v57, 0.0 }
 0x1f3   : > { %v826_v3 = vmax.f32 %v754_v63, 0.0 }
 0x1f4   : > { %v827_v9 = vmax.f32 %v756_v1, 0.0 }
 0x1f5   : > { %v860_v10 = vpack.c.bf16 %v826_v3, %v824_v2 }
 0x1f6   : > { %v861_v11 = vpack.c.bf16 %v827_v9, %v825_v8  ;;  %v759_v12 = vpop.f32.mrb[60].mxu0  ;;  %v1817_v9 = vld [vmem:[%s2225_s6 + $0x8] sm:$0xff] }
 0x1f7   : > { %v760_v13 = vadd.f32 %v759_v12, %v2404_v29  ;;  %v761_v18 = vpop.f32.mrb[61].mxu0 }
 0x1f8   : > { %v762_v19 = vadd.f32 %v761_v18, %v2408_v30  ;;  %v763_v20 = vpop.f32.mrb[62].mxu0  ;;  %1240 = vmatprep.mubr.bf16.mxu1 %v861_v11 }
 0x1f9   : > { %v764_v23 = vadd.f32 %v763_v20, %v2404_v29  ;;  %v765_v31 = vpop.f32.mrb[63].mxu0  ;;  %1241 = vmatmul.mubr.bf16.gmra.mrb[56].mxu1 %v860_v10  ;;  %v828_v33 = vmax.f32 %v760_v13, 0.0  ;;  %v2479_v29 = vrot.slane %v896_v53, %v407_v22  ;;  %v1818_v13 = vld [vmem:[%s2225_s6 + $0x18] sm:$0xff] }
 0x1fa   : > { %v766_v32 = vadd.f32 %v765_v31, %v2408_v30  ;;  %v829_v43 = vmax.f32 %v762_v19, 0.0  ;;  %v2483_v30 = vrot.slane %v896_v53, %v411_v28 }
 0x1fb   : > { %v830_v42 = vmax.f32 %v764_v23, 0.0 }
 0x1fc   : > { %v831_v46 = vmax.f32 %v766_v32, 0.0 }
 0x1fd   : > { %v862_v47 = vpack.c.bf16 %v830_v42, %v828_v33 }
 0x1fe   : > { %v863_v52 = vpack.c.bf16 %v831_v46, %v829_v43 }
 0x200   : > { %1250 = vmatprep.mubr.bf16.mxu1 %v863_v52 }
 0x201   : > { %1251 = vmatmul.mubr.bf16.gmra.mrb[60].mxu1 %v862_v47 }
 0x25c   : > { %v1102_v56 = vpop.f32.mrb[0].mxu1 }
 0x25d   : > { %v1103_v57 = vadd.f32 %v1102_v56, %v2479_v29  ;;  %v1104_v62 = vpop.f32.mrb[1].mxu1 }
 0x25e   : > { %v1105_v63 = vadd.f32 %v1104_v62, %v2483_v30  ;;  %v1106_v0 = vpop.f32.mrb[2].mxu1 }
 0x25f   : > { %v1261_v1 = vmax.f32 %v1103_v57, 0.0  ;;  %v1107_v2 = vadd.f32 %v1106_v0, %v2479_v29  ;;  %v1108_v3 = vpop.f32.mrb[3].mxu1 }
 0x260   : > { %v1262_v8 = vmax.f32 %v1105_v63, 0.0  ;;  %v1109_v22 = vadd.f32 %v1108_v3, %v2483_v30 }
 0x261   : > { %v1325_v21 = vadd.f32 %v1261_v1, %v2238_v38  ;;  %v1263_v28 = vmax.f32 %v1107_v2, 0.0 }
 0x262   : > { %v1326_v10 = vadd.f32 %v1817_v9, %v1262_v8  ;;  %v1264_v11 = vmax.f32 %v1109_v22, 0.0 }
 0x263   : > { %1389 = vst [vmem:[%s2493_s11] sm:$0xff] %v1325_v21  ;;  %v1327_v12 = vadd.f32 %v1263_v28, %v2241_v39 }
 0x264   : > { %1390 = vst [vmem:[%s2493_s11 + $0x8] sm:$0xff] %v1326_v10  ;;  %v1328_v18 = vadd.f32 %v1818_v13, %v1264_v11  ;;  %v1112_v19 = vpop.f32.mrb[4].mxu1 }
 0x265   : > { %1391 = vst [vmem:[%s2493_s11 + $0x10] sm:$0xff] %v1327_v12  ;;  %v1113_v38 = vadd.f32 %v1112_v19, %v2479_v29  ;;  %v1114_v20 = vpop.f32.mrb[5].mxu1 }
 0x266   : > { %1392 = vst [vmem:[%s2493_s11 + $0x18] sm:$0xff] %v1328_v18  ;;  %v1115_v23 = vadd.f32 %v1114_v20, %v2483_v30  ;;  %v1116_v31 = vpop.f32.mrb[6].mxu1 }
 0x267   : > { %v1265_v32 = vmax.f32 %v1113_v38, 0.0  ;;  %v1117_v33 = vadd.f32 %v1116_v31, %v2479_v29  ;;  %v1118_v39 = vpop.f32.mrb[7].mxu1 }
 0x268   : > { %v1266_v42 = vmax.f32 %v1115_v23, 0.0  ;;  %v1119_v43 = vadd.f32 %v1118_v39, %v2483_v30 }
 0x269   : > { %v1329_v46 = vadd.f32 %v1265_v32, %v2254_v48  ;;  %v1267_v47 = vmax.f32 %v1117_v33, 0.0 }
 0x26a   : > { %v1330_v52 = vadd.f32 %v1266_v42, %v2244_v40  ;;  %v1268_v53 = vmax.f32 %v1119_v43, 0.0 }
 0x26b   : > { %1393 = vst [vmem:[%s2493_s11 + $0x20] sm:$0xff] %v1329_v46  ;;  %v1331_v56 = vadd.f32 %v1267_v47, %v2257_v49 }
 0x26c   : > { %1394 = vst [vmem:[%s2493_s11 + $0x28] sm:$0xff] %v1330_v52  ;;  %v1332_v57 = vadd.f32 %v1268_v53, %v2247_v41  ;;  %v1122_v62 = vpop.f32.mrb[8].mxu1 }
 0x26d   : > { %1395 = vst [vmem:[%s2493_s11 + $0x30] sm:$0xff] %v1331_v56  ;;  %v1123_v63 = vadd.f32 %v1122_v62, %v2479_v29  ;;  %v1124_v0 = vpop.f32.mrb[9].mxu1 }
 0x26e   : > { %1396 = vst [vmem:[%s2493_s11 + $0x38] sm:$0xff] %v1332_v57  ;;  %v1125_v48 = vadd.f32 %v1124_v0, %v2483_v30  ;;  %v1126_v1 = vpop.f32.mrb[10].mxu1 }
 0x26f   : > { %v1269_v40 = vmax.f32 %v1123_v63, 0.0  ;;  %v1127_v2 = vadd.f32 %v1126_v1, %v2479_v29  ;;  %v1128_v49 = vpop.f32.mrb[11].mxu1 }
 0x270   : > { %v1270_v3 = vmax.f32 %v1125_v48, 0.0  ;;  %v1129_v41 = vadd.f32 %v1128_v49, %v2483_v30 }
 0x271   : > { %v1333_v8 = vadd.f32 %v1269_v40, %v2270_v58  ;;  %v1271_v22 = vmax.f32 %v1127_v2, 0.0 }
 0x272   : > { %v1334_v21 = vadd.f32 %v1270_v3, %v2260_v50  ;;  %v1272_v28 = vmax.f32 %v1129_v41, 0.0 }
 0x273   : > { %1397 = vst [vmem:[%s2493_s11 + $0x40] sm:$0xff] %v1333_v8  ;;  %v1335_v9 = vadd.f32 %v1271_v22, %v2273_v59 }
 0x274   : > { %1398 = vst [vmem:[%s2493_s11 + $0x48] sm:$0xff] %v1334_v21  ;;  %v1336_v10 = vadd.f32 %v1272_v28, %v2263_v51  ;;  %v1132_v11 = vpop.f32.mrb[12].mxu1 }
 0x275   : > { %1399 = vst [vmem:[%s2493_s11 + $0x50] sm:$0xff] %v1335_v9  ;;  %v1133_v12 = vadd.f32 %v1132_v11, %v2479_v29  ;;  %v1134_v13 = vpop.f32.mrb[13].mxu1 }
 0x276   : > { %1400 = vst [vmem:[%s2493_s11 + $0x58] sm:$0xff] %v1336_v10  ;;  %v1135_v58 = vadd.f32 %v1134_v13, %v2483_v30  ;;  %v1136_v18 = vpop.f32.mrb[14].mxu1 }
 0x277   : > { %v1273_v50 = vmax.f32 %v1133_v12, 0.0  ;;  %v1137_v19 = vadd.f32 %v1136_v18, %v2479_v29  ;;  %v1138_v59 = vpop.f32.mrb[15].mxu1 }
 0x278   : > { %v1274_v38 = vmax.f32 %v1135_v58, 0.0  ;;  %v1139_v51 = vadd.f32 %v1138_v59, %v2483_v30 }
 0x279   : > { %v1337_v20 = vadd.f32 %v1273_v50, %v2286_v4  ;;  %v1275_v23 = vmax.f32 %v1137_v19, 0.0 }
 0x27a   : > { %v1338_v31 = vadd.f32 %v1274_v38, %v2276_v60  ;;  %v1276_v32 = vmax.f32 %v1139_v51, 0.0 }
 0x27b   : > { %1401 = vst [vmem:[%s2493_s11 + $0x60] sm:$0xff] %v1337_v20  ;;  %v1339_v33 = vadd.f32 %v1275_v23, %v2289_v5 }
 0x27c   : > { %1402 = vst [vmem:[%s2493_s11 + $0x68] sm:$0xff] %v1338_v31  ;;  %v1340_v39 = vadd.f32 %v1276_v32, %v2279_v61  ;;  %v1142_v42 = vpop.f32.mrb[16].mxu1 }
 0x27d   : > { %1403 = vst [vmem:[%s2493_s11 + $0x70] sm:$0xff] %v1339_v33  ;;  %v1143_v43 = vadd.f32 %v1142_v42, %v2479_v29  ;;  %v1144_v46 = vpop.f32.mrb[17].mxu1 }
 0x27e   : > { %1404 = vst [vmem:[%s2493_s11 + $0x78] sm:$0xff] %v1340_v39  ;;  %v1145_v4 = vadd.f32 %v1144_v46, %v2483_v30  ;;  %v1146_v47 = vpop.f32.mrb[18].mxu1 }
 0x27f   : > { %v1277_v60 = vmax.f32 %v1143_v43, 0.0  ;;  %v1147_v52 = vadd.f32 %v1146_v47, %v2479_v29  ;;  %v1148_v5 = vpop.f32.mrb[19].mxu1 }
 0x280   : > { %v1278_v53 = vmax.f32 %v1145_v4, 0.0  ;;  %v1149_v61 = vadd.f32 %v1148_v5, %v2483_v30 }
 0x281   : > { %v1341_v56 = vadd.f32 %v1277_v60, %v2302_v14  ;;  %v1279_v57 = vmax.f32 %v1147_v52, 0.0 }
 0x282   : > { %v1342_v62 = vadd.f32 %v1278_v53, %v2292_v6  ;;  %v1280_v63 = vmax.f32 %v1149_v61, 0.0 }
 0x283   : > { %1405 = vst [vmem:[%s2493_s11 + $0x80] sm:$0xff] %v1341_v56  ;;  %v1343_v0 = vadd.f32 %v1279_v57, %v2305_v15 }
 0x284   : > { %1406 = vst [vmem:[%s2493_s11 + $0x88] sm:$0xff] %v1342_v62  ;;  %v1344_v48 = vadd.f32 %v1280_v63, %v2295_v7  ;;  %v1152_v1 = vpop.f32.mrb[20].mxu1 }
 0x285   : > { %1407 = vst [vmem:[%s2493_s11 + $0x90] sm:$0xff] %v1343_v0  ;;  %v1153_v40 = vadd.f32 %v1152_v1, %v2479_v29  ;;  %v1154_v2 = vpop.f32.mrb[21].mxu1  ;;  %v1819_v1 = vld [vmem:[%s2225_s6 + $0x108] sm:$0xff] }
 0x286   : > { %1408 = vst [vmem:[%s2493_s11 + $0x98] sm:$0xff] %v1344_v48  ;;  %v1155_v14 = vadd.f32 %v1154_v2, %v2483_v30  ;;  %v1156_v49 = vpop.f32.mrb[22].mxu1 }
 0x287   : > { %v1281_v6 = vmax.f32 %v1153_v40, 0.0  ;;  %v1157_v3 = vadd.f32 %v1156_v49, %v2479_v29  ;;  %v1158_v15 = vpop.f32.mrb[23].mxu1  ;;  %v1820_v49 = vld [vmem:[%s2225_s6 + $0x118] sm:$0xff] }
 0x288   : > { %v1282_v41 = vmax.f32 %v1155_v14, 0.0  ;;  %v1159_v7 = vadd.f32 %v1158_v15, %v2483_v30 }
 0x289   : > { %v1345_v8 = vadd.f32 %v1281_v6, %v2318_v24  ;;  %v1283_v22 = vmax.f32 %v1157_v3, 0.0 }
 0x28a   : > { %v1346_v21 = vadd.f32 %v1282_v41, %v2308_v16  ;;  %v1284_v28 = vmax.f32 %v1159_v7, 0.0 }
 0x28b   : > { %1409 = vst [vmem:[%s2493_s11 + $0xa0] sm:$0xff] %v1345_v8  ;;  %v1347_v9 = vadd.f32 %v1283_v22, %v2321_v25 }
 0x28c   : > { %1410 = vst [vmem:[%s2493_s11 + $0xa8] sm:$0xff] %v1346_v21  ;;  %v1348_v10 = vadd.f32 %v1284_v28, %v2311_v17  ;;  %v1162_v11 = vpop.f32.mrb[24].mxu1 }
 0x28d   : > { %1411 = vst [vmem:[%s2493_s11 + $0xb0] sm:$0xff] %v1347_v9  ;;  %v1163_v12 = vadd.f32 %v1162_v11, %v2479_v29  ;;  %v1164_v13 = vpop.f32.mrb[25].mxu1  ;;  %v1821_v9 = vld [vmem:[%s2225_s6 + $0x120] sm:$0xff] }
 0x28e   : > { %1412 = vst [vmem:[%s2493_s11 + $0xb8] sm:$0xff] %v1348_v10  ;;  %v1165_v24 = vadd.f32 %v1164_v13, %v2483_v30  ;;  %v1166_v58 = vpop.f32.mrb[26].mxu1 }
 0x28f   : > { %v1285_v16 = vmax.f32 %v1163_v12, 0.0  ;;  %v1167_v18 = vadd.f32 %v1166_v58, %v2479_v29  ;;  %v1168_v25 = vpop.f32.mrb[27].mxu1  ;;  %v1822_v12 = vld [vmem:[%s2225_s6 + $0x128] sm:$0xff]  ;;  %v1823_v58 = vld [vmem:[%s2225_s6 + $0x130] sm:$0xff] }
 0x290   : > { %v1286_v50 = vmax.f32 %v1165_v24, 0.0  ;;  %v1169_v17 = vadd.f32 %v1168_v25, %v2483_v30 }
 0x291   : > { %v1349_v19 = vadd.f32 %v1285_v16, %v2334_v34  ;;  %v1287_v59 = vmax.f32 %v1167_v18, 0.0  ;;  %v1824_v18 = vld [vmem:[%s2225_s6 + $0x138] sm:$0xff] }
 0x292   : > { %v1350_v38 = vadd.f32 %v1286_v50, %v2324_v26  ;;  %v1288_v51 = vmax.f32 %v1169_v17, 0.0 }
 0x293   : > { %1413 = vst [vmem:[%s2493_s11 + $0xc0] sm:$0xff] %v1349_v19  ;;  %v1351_v20 = vadd.f32 %v1287_v59, %v2337_v35 }
 0x294   : > { %1414 = vst [vmem:[%s2493_s11 + $0xc8] sm:$0xff] %v1350_v38  ;;  %v1352_v23 = vadd.f32 %v1288_v51, %v2327_v27  ;;  %v1172_v31 = vpop.f32.mrb[28].mxu1 }
 0x295   : > { %1415 = vst [vmem:[%s2493_s11 + $0xd0] sm:$0xff] %v1351_v20  ;;  %v1173_v32 = vadd.f32 %v1172_v31, %v2479_v29  ;;  %v1174_v33 = vpop.f32.mrb[29].mxu1 }
 0x296   : > { %1416 = vst [vmem:[%s2493_s11 + $0xd8] sm:$0xff] %v1352_v23  ;;  %v1175_v34 = vadd.f32 %v1174_v33, %v2483_v30  ;;  %v1176_v39 = vpop.f32.mrb[30].mxu1  ;;  %v1825_v33 = vld [vmem:[%s2225_s6 + $0x140] sm:$0xff] }
 0x297   : > { %v1289_v26 = vmax.f32 %v1173_v32, 0.0  ;;  %v1177_v42 = vadd.f32 %v1176_v39, %v2479_v29  ;;  %v1178_v35 = vpop.f32.mrb[31].mxu1 }
 0x298   : > { %v1290_v43 = vmax.f32 %v1175_v34, 0.0  ;;  %v1179_v27 = vadd.f32 %v1178_v35, %v2483_v30 }
 0x299   : > { %v1353_v46 = vadd.f32 %v1289_v26, %v2350_v44  ;;  %v1291_v4 = vmax.f32 %v1177_v42, 0.0  ;;  %v1826_v26 = vld [vmem:[%s2225_s6 + $0x148] sm:$0xff] }
 0x29a   : > { %v1354_v47 = vadd.f32 %v1290_v43, %v2340_v36  ;;  %v1292_v60 = vmax.f32 %v1179_v27, 0.0  ;;  %v1827_v43 = vld [vmem:[%s2225_s6 + $0x150] sm:$0xff] }
 0x29b   : > { %1417 = vst [vmem:[%s2493_s11 + $0xe0] sm:$0xff] %v1353_v46  ;;  %v1355_v52 = vadd.f32 %v1291_v4, %v2353_v45  ;;  %v1828_v46 = vld [vmem:[%s2225_s6 + $0x158] sm:$0xff] }
 0x29c   : > { %1418 = vst [vmem:[%s2493_s11 + $0xe8] sm:$0xff] %v1354_v47  ;;  %v1356_v5 = vadd.f32 %v1292_v60, %v2343_v37  ;;  %v1182_v53 = vpop.f32.mrb[32].mxu1 }
 0x29d   : > { %1419 = vst [vmem:[%s2493_s11 + $0xf0] sm:$0xff] %v1355_v52  ;;  %v1183_v61 = vadd.f32 %v1182_v53, %v2479_v29  ;;  %v1184_v56 = vpop.f32.mrb[33].mxu1 }
 0x29e   : > { %1420 = vst [vmem:[%s2493_s11 + $0xf8] sm:$0xff] %v1356_v5  ;;  %v1185_v44 = vadd.f32 %v1184_v56, %v2483_v30  ;;  %v1186_v36 = vpop.f32.mrb[34].mxu1 }
 0x29f   : > { %v1293_v57 = vmax.f32 %v1183_v61, 0.0  ;;  %v1187_v45 = vadd.f32 %v1186_v36, %v2479_v29  ;;  %v1188_v62 = vpop.f32.mrb[35].mxu1 }
 0x2a0   : > { %v1294_v63 = vmax.f32 %v1185_v44, 0.0  ;;  %v1189_v37 = vadd.f32 %v1188_v62, %v2483_v30 }
 0x2a1   : > { %v1357_v0 = vadd.f32 %v1293_v57, %v2360_v54  ;;  %v1295_v48 = vmax.f32 %v1187_v45, 0.0  ;;  %v1829_v45 = vld [vmem:[%s2225_s6 + $0x160] sm:$0xff] }
 0x2a2   : > { %v1358_v40 = vadd.f32 %v1819_v1, %v1294_v63  ;;  %v1296_v2 = vmax.f32 %v1189_v37, 0.0  ;;  %v1830_v37 = vld [vmem:[%s2225_s6 + $0x168] sm:$0xff]  ;;  %v1831_v1 = vld [vmem:[%s2225_s6 + $0x170] sm:$0xff] }
 0x2a3   : > { %1421 = vst [vmem:[%s2493_s11 + $0x100] sm:$0xff] %v1357_v0  ;;  %v1359_v14 = vadd.f32 %v1295_v48, %v2363_v55 }
 0x2a4   : > { %1422 = vst [vmem:[%s2493_s11 + $0x108] sm:$0xff] %v1358_v40  ;;  %v1360_v6 = vadd.f32 %v1820_v49, %v1296_v2  ;;  %v1192_v3 = vpop.f32.mrb[36].mxu1  ;;  %v1832_v2 = vld [vmem:[%s2225_s6 + $0x178] sm:$0xff] }
 0x2a5   : > { %1423 = vst [vmem:[%s2493_s11 + $0x110] sm:$0xff] %v1359_v14  ;;  %v1193_v15 = vadd.f32 %v1192_v3, %v2479_v29  ;;  %v1194_v41 = vpop.f32.mrb[37].mxu1 }
 0x2a6   : > { %1424 = vst [vmem:[%s2493_s11 + $0x118] sm:$0xff] %v1360_v6  ;;  %v1195_v54 = vadd.f32 %v1194_v41, %v2483_v30  ;;  %v1196_v7 = vpop.f32.mrb[38].mxu1 }
 0x2a7   : > { %v1297_v8 = vmax.f32 %v1193_v15, 0.0  ;;  %v1197_v55 = vadd.f32 %v1196_v7, %v2479_v29  ;;  %v1198_v22 = vpop.f32.mrb[39].mxu1 }
 0x2a8   : > { %v1298_v21 = vmax.f32 %v1195_v54, 0.0  ;;  %v1199_v28 = vadd.f32 %v1198_v22, %v2483_v30 }
 0x2a9   : > { %v1361_v10 = vadd.f32 %v1821_v9, %v1297_v8  ;;  %v1299_v11 = vmax.f32 %v1197_v55, 0.0 }
 0x2aa   : > { %v1362_v13 = vadd.f32 %v1822_v12, %v1298_v21  ;;  %v1300_v24 = vmax.f32 %v1199_v28, 0.0  ;;  %v1833_v21 = vld [vmem:[%s2225_s6 + $0x180] sm:$0xff] }
 0x2ab   : > { %1425 = vst [vmem:[%s2493_s11 + $0x120] sm:$0xff] %v1361_v10  ;;  %v1363_v16 = vadd.f32 %v1823_v58, %v1299_v11  ;;  %v1834_v10 = vld [vmem:[%s2225_s6 + $0x188] sm:$0xff]  ;;  %v1836_v58 = vld [vmem:[%s2225_s6 + $0x198] sm:$0xff] }
 0x2ac   : > { %1426 = vst [vmem:[%s2493_s11 + $0x128] sm:$0xff] %v1362_v13  ;;  %v1364_v25 = vadd.f32 %v1824_v18, %v1300_v24  ;;  %v1202_v50 = vpop.f32.mrb[40].mxu1  ;;  %v1835_v13 = vld [vmem:[%s2225_s6 + $0x190] sm:$0xff] }
 0x2ad   : > { %1427 = vst [vmem:[%s2493_s11 + $0x130] sm:$0xff] %v1363_v16  ;;  %v1203_v17 = vadd.f32 %v1202_v50, %v2479_v29  ;;  %v1204_v19 = vpop.f32.mrb[41].mxu1 }
 0x2ae   : > { %1428 = vst [vmem:[%s2493_s11 + $0x138] sm:$0xff] %v1364_v25  ;;  %v1205_v59 = vadd.f32 %v1204_v19, %v2483_v30  ;;  %v1206_v38 = vpop.f32.mrb[42].mxu1 }
 0x2af   : > { %v1301_v51 = vmax.f32 %v1203_v17, 0.0  ;;  %v1207_v20 = vadd.f32 %v1206_v38, %v2479_v29  ;;  %v1208_v23 = vpop.f32.mrb[43].mxu1 }
 0x2b0   : > { %v1302_v31 = vmax.f32 %v1205_v59, 0.0  ;;  %v1209_v32 = vadd.f32 %v1208_v23, %v2483_v30 }
 0x2b1   : > { %v1365_v34 = vadd.f32 %v1825_v33, %v1301_v51  ;;  %v1303_v39 = vmax.f32 %v1207_v20, 0.0 }
 0x2b2   : > { %v1366_v42 = vadd.f32 %v1826_v26, %v1302_v31  ;;  %v1304_v35 = vmax.f32 %v1209_v32, 0.0  ;;  %v1837_v31 = vld [vmem:[%s2225_s6 + $0x1a0] sm:$0xff] }
 0x2b3   : > { %1429 = vst [vmem:[%s2493_s11 + $0x140] sm:$0xff] %v1365_v34  ;;  %v1367_v27 = vadd.f32 %v1827_v43, %v1303_v39  ;;  %v1838_v34 = vld [vmem:[%s2225_s6 + $0x1a8] sm:$0xff]  ;;  %v1840_v43 = vld [vmem:[%s2225_s6 + $0x1b8] sm:$0xff] }
 0x2b4   : > { %1430 = vst [vmem:[%s2493_s11 + $0x148] sm:$0xff] %v1366_v42  ;;  %v1368_v4 = vadd.f32 %v1828_v46, %v1304_v35  ;;  %v1212_v47 = vpop.f32.mrb[44].mxu1  ;;  %v1839_v42 = vld [vmem:[%s2225_s6 + $0x1b0] sm:$0xff] }
 0x2b5   : > { %1431 = vst [vmem:[%s2493_s11 + $0x150] sm:$0xff] %v1367_v27  ;;  %v1213_v60 = vadd.f32 %v1212_v47, %v2479_v29  ;;  %v1214_v52 = vpop.f32.mrb[45].mxu1 }
 0x2b6   : > { %1432 = vst [vmem:[%s2493_s11 + $0x158] sm:$0xff] %v1368_v4  ;;  %v1215_v5 = vadd.f32 %v1214_v52, %v2483_v30  ;;  %v1216_v53 = vpop.f32.mrb[46].mxu1 }
 0x2b7   : > { %v1305_v61 = vmax.f32 %v1213_v60, 0.0  ;;  %v1217_v56 = vadd.f32 %v1216_v53, %v2479_v29  ;;  %v1218_v44 = vpop.f32.mrb[47].mxu1 }
 0x2b8   : > { %v1306_v36 = vmax.f32 %v1215_v5, 0.0  ;;  %v1219_v57 = vadd.f32 %v1218_v44, %v2483_v30 }
 0x2b9   : > { %v1369_v62 = vadd.f32 %v1829_v45, %v1305_v61  ;;  %v1307_v63 = vmax.f32 %v1217_v56, 0.0 }
 0x2ba   : > { %v1370_v0 = vadd.f32 %v1830_v37, %v1306_v36  ;;  %v1308_v48 = vmax.f32 %v1219_v57, 0.0  ;;  %v1841_v36 = vld [vmem:[%s2225_s6 + $0x1c0] sm:$0xff] }
 0x2bb   : > { %1433 = vst [vmem:[%s2493_s11 + $0x160] sm:$0xff] %v1369_v62  ;;  %v1371_v40 = vadd.f32 %v1831_v1, %v1307_v63  ;;  %v1842_v62 = vld [vmem:[%s2225_s6 + $0x1c8] sm:$0xff]  ;;  %v1844_v1 = vld [vmem:[%s2225_s6 + $0x1d8] sm:$0xff] }
 0x2bc   : > { %1434 = vst [vmem:[%s2493_s11 + $0x168] sm:$0xff] %v1370_v0  ;;  %v1372_v14 = vadd.f32 %v1832_v2, %v1308_v48  ;;  %v1222_v49 = vpop.f32.mrb[48].mxu1  ;;  %v1843_v0 = vld [vmem:[%s2225_s6 + $0x1d0] sm:$0xff] }
 0x2bd   : > { %1435 = vst [vmem:[%s2493_s11 + $0x170] sm:$0xff] %v1371_v40  ;;  %v1223_v6 = vadd.f32 %v1222_v49, %v2479_v29  ;;  %v1224_v3 = vpop.f32.mrb[49].mxu1 }
 0x2be   : > { %1436 = vst [vmem:[%s2493_s11 + $0x178] sm:$0xff] %v1372_v14  ;;  %v1225_v15 = vadd.f32 %v1224_v3, %v2483_v30  ;;  %v1226_v41 = vpop.f32.mrb[50].mxu1 }
 0x2bf   : > { %v1309_v54 = vmax.f32 %v1223_v6, 0.0  ;;  %v1227_v7 = vadd.f32 %v1226_v41, %v2479_v29  ;;  %v1228_v8 = vpop.f32.mrb[51].mxu1 }
 0x2c0   : > { %v1310_v55 = vmax.f32 %v1225_v15, 0.0  ;;  %v1229_v22 = vadd.f32 %v1228_v8, %v2483_v30 }
 0x2c1   : > { %v1373_v28 = vadd.f32 %v1833_v21, %v1309_v54  ;;  %v1311_v9 = vmax.f32 %v1227_v7, 0.0 }
 0x2c2   : > { %v1374_v11 = vadd.f32 %v1834_v10, %v1310_v55  ;;  %v1312_v12 = vmax.f32 %v1229_v22, 0.0  ;;  %v1845_v55 = vld [vmem:[%s2225_s6 + $0x1e0] sm:$0xff] }
 0x2c3   : > { %1437 = vst [vmem:[%s2493_s11 + $0x180] sm:$0xff] %v1373_v28  ;;  %v1375_v24 = vadd.f32 %v1835_v13, %v1311_v9  ;;  %v1846_v28 = vld [vmem:[%s2225_s6 + $0x1e8] sm:$0xff] }
 0x2c4   : > { %1438 = vst [vmem:[%s2493_s11 + $0x188] sm:$0xff] %v1374_v11  ;;  %v1376_v16 = vadd.f32 %v1836_v58, %v1312_v12  ;;  %v1232_v18 = vpop.f32.mrb[52].mxu1 }
 0x2c5   : > { %1439 = vst [vmem:[%s2493_s11 + $0x190] sm:$0xff] %v1375_v24  ;;  %v1233_v25 = vadd.f32 %v1232_v18, %v2479_v29  ;;  %v1234_v50 = vpop.f32.mrb[53].mxu1 }
 0x2c6   : > { %1440 = vst [vmem:[%s2493_s11 + $0x198] sm:$0xff] %v1376_v16  ;;  %v1235_v17 = vadd.f32 %v1234_v50, %v2483_v30  ;;  %v1236_v19 = vpop.f32.mrb[54].mxu1 }
 0x2c7   : > { %v1313_v59 = vmax.f32 %v1233_v25, 0.0  ;;  %v1237_v38 = vadd.f32 %v1236_v19, %v2479_v29  ;;  %v1238_v51 = vpop.f32.mrb[55].mxu1 }
 0x2c8   : > { %v1314_v20 = vmax.f32 %v1235_v17, 0.0  ;;  %v1239_v23 = vadd.f32 %v1238_v51, %v2483_v30 }
 0x2c9   : > { %v1377_v32 = vadd.f32 %v1837_v31, %v1313_v59  ;;  %v1315_v33 = vmax.f32 %v1237_v38, 0.0 }
 0x2ca   : > { %v1378_v39 = vadd.f32 %v1838_v34, %v1314_v20  ;;  %v1316_v26 = vmax.f32 %v1239_v23, 0.0 }
 0x2cb   : > { %1441 = vst [vmem:[%s2493_s11 + $0x1a0] sm:$0xff] %v1377_v32  ;;  %v1379_v35 = vadd.f32 %v1839_v42, %v1315_v33 }
 0x2cc   : > { %1442 = vst [vmem:[%s2493_s11 + $0x1a8] sm:$0xff] %v1378_v39  ;;  %v1380_v27 = vadd.f32 %v1840_v43, %v1316_v26  ;;  %v1242_v46 = vpop.f32.mrb[56].mxu1 }
 0x2cd   : > { %1443 = vst [vmem:[%s2493_s11 + $0x1b0] sm:$0xff] %v1379_v35  ;;  %v1243_v4 = vadd.f32 %v1242_v46, %v2479_v29  ;;  %v1244_v47 = vpop.f32.mrb[57].mxu1 }
 0x2ce   : > { %1444 = vst [vmem:[%s2493_s11 + $0x1b8] sm:$0xff] %v1380_v27  ;;  %v1245_v60 = vadd.f32 %v1244_v47, %v2483_v30  ;;  %v1246_v52 = vpop.f32.mrb[58].mxu1 }
 0x2cf   : > { %v1317_v5 = vmax.f32 %v1243_v4, 0.0  ;;  %v1247_v53 = vadd.f32 %v1246_v52, %v2479_v29  ;;  %v1248_v61 = vpop.f32.mrb[59].mxu1 }
 0x2d0   : > { %v1318_v56 = vmax.f32 %v1245_v60, 0.0  ;;  %v1249_v44 = vadd.f32 %v1248_v61, %v2483_v30 }
 0x2d1   : > { %v1381_v57 = vadd.f32 %v1841_v36, %v1317_v5  ;;  %v1319_v45 = vmax.f32 %v1247_v53, 0.0 }
 0x2d2   : > { %v1382_v63 = vadd.f32 %v1842_v62, %v1318_v56  ;;  %v1320_v37 = vmax.f32 %v1249_v44, 0.0 }
 0x2d3   : > { %1445 = vst [vmem:[%s2493_s11 + $0x1c0] sm:$0xff] %v1381_v57  ;;  %v1383_v48 = vadd.f32 %v1843_v0, %v1319_v45 }
 0x2d4   : > { %1446 = vst [vmem:[%s2493_s11 + $0x1c8] sm:$0xff] %v1382_v63  ;;  %v1384_v40 = vadd.f32 %v1844_v1, %v1320_v37  ;;  %v1252_v2 = vpop.f32.mrb[60].mxu1 }
 0x2d5   : > { %1447 = vst [vmem:[%s2493_s11 + $0x1d0] sm:$0xff] %v1383_v48  ;;  %v1253_v14 = vadd.f32 %v1252_v2, %v2479_v29  ;;  %v1254_v49 = vpop.f32.mrb[61].mxu1 }
 0x2d6   : > { %1448 = vst [vmem:[%s2493_s11 + $0x1d8] sm:$0xff] %v1384_v40  ;;  %v1255_v6 = vadd.f32 %v1254_v49, %v2483_v30  ;;  %v1256_v3 = vpop.f32.mrb[62].mxu1 }
 0x2d7   : > { %v1321_v15 = vmax.f32 %v1253_v14, 0.0  ;;  %v1257_v41 = vadd.f32 %v1256_v3, %v2479_v29  ;;  %v1258_v54 = vpop.f32.mrb[63].mxu1  ;;  %v1847_v29 = vld [vmem:[%s2225_s6 + $0x1f0] sm:$0xff] }
 0x2d8   : > { %v1322_v7 = vmax.f32 %v1255_v6, 0.0  ;;  %v1259_v8 = vadd.f32 %v1258_v54, %v2483_v30  ;;  %v1848_v30 = vld [vmem:[%s2225_s6 + $0x1f8] sm:$0xff] }
 0x2d9   : > { %v1385_v22 = vadd.f32 %v1845_v55, %v1321_v15  ;;  %v1323_v21 = vmax.f32 %v1257_v41, 0.0 }
 0x2da   : > { %v1386_v9 = vadd.f32 %v1846_v28, %v1322_v7  ;;  %v1324_v10 = vmax.f32 %v1259_v8, 0.0 }
 0x2db   : > { %1449 = vst [vmem:[%s2493_s11 + $0x1e0] sm:$0xff] %v1385_v22  ;;  %v1387_v11 = vadd.f32 %v1847_v29, %v1323_v21 }
 0x2dc   : > { %1450 = vst [vmem:[%s2493_s11 + $0x1e8] sm:$0xff] %v1386_v9  ;;  %v1388_v12 = vadd.f32 %v1848_v30, %v1324_v10 }
 0x2dd   : > { %1451 = vst [vmem:[%s2493_s11 + $0x1f0] sm:$0xff] %v1387_v11 }
 0x2de   : > { %1452 = vst [vmem:[%s2493_s11 + $0x1f8] sm:$0xff] %v1388_v12 }
 0x2df   : > { %1948 = shalt.err (!%p1945_p2)
}
 0x2e0   : > { %s1949_s6 = scalar_lea.hbm %s2682_s9, 8192  ;;  %s1953_s8 = scalar_lea.hbm %s2737_s5, 16384 }
 0x2e1   : > { %p1950_p13 = scmp.ne.s32.totalorder %s2682_s9, %s1949_s6  ;;  %p1954_p4 = scmp.lt.u32.totalorder %s2682_s9, %s2737_s5 }
 0x2e2   : > { %p1955_p5 = scmp.lt.u32.totalorder %s1953_s8, %s1949_s6  ;;  %p1957_p11 = scmp.lt.u32.totalorder %s1949_s6, %s2682_s9 }
 0x2e3   : > { %p1951_p6 = pnand %p1950_p13, %p2751_p0 }
 0x2e4   : > { %p1956_p8 = por %p1955_p5, %p1954_p4 }
 0x2e5   : > { %p1952_p10 = pneg %p1951_p6 }
 0x2e6   : > { %p1958_p1 = por %p1957_p11, %p1956_p8 }
 0x2e8   : > { %p1959_p3 = pnand %p1958_p1, %p1952_p10 }
 0x2ea   : > { %1962 = shalt.err (!%p1959_p3)
}
 0x2eb   : > { %s2015_s28 = smov 256   ;;  %s2016_s15 = smov 16  }
 0x2ec   : > { %1658 = dma.vmem_to_hbm [thread:$0]  (%p2751_p0), %s2684_s30, 8192, %s2682_s9, %s1454_s22, %s2015_s28, %s2015_s28, %s2016_s15  }
 0x2ed PF: > { %s1483_s16 = sand.u32 1, %s1993_s18   ;;  %p2752_p7 = scmp.ne.s32.totalorder %s2742_s25, 0 }
 0x2ee   : > { %p2753_p9 = scmp.ge.s32.totalorder %s2005_s21, 2  ;;  %s1484_s12 = scalar_lea.sflag [#allocation4], %s1483_s16 }
 0x2f0   : > { %p1672_p12 = pnand %p2753_p9, %p2752_p7 }
 0x2f2   : > { %1988 = dma.done.wait (!%p1672_p12), %s1484_s12, 8192  }
 0x2f3   : > { %1990 = vsyncadd (!%p1672_p12), %s1484_s12, 4294959104  ;;  %p19_p2 = scmp.ge.s32.totalorder %s2157_s14, 4   ;;  %s2754_s18 = smov %s1997_s19 }
 0x2f4   : > { %s2755_s19 = smov %s2001_s20  ;;  %s2756_s20 = smov %s2173_s27 }
 0x2f5   : > { %s2757_s21 = smov %s2157_s14  ;;  %21 = sbr.rel (!%p19_p2) target bundleno = 6 (0x6), region = 93 }
 0x2fc   :  { %1489 = vsyncpa [#allocation3], 1 }
 0x2fd   :  { %1491 = vsyncpa [#allocation3 + $0x1], 1 }
 0x2fe   :  { %1492 = vsyncpa [#allocation6], 1 }
 0x2ff   :  { %1493 = vsyncpa [#allocation4], 1 }
 0x300   :  { %1495 = vsyncpa [#allocation4 + $0x1], 1 }

</bundles_post_ra>
